<compile_context>
chip_gen: v6e
topology: v6e:2x2x1
jax: 0.10.0
libtpu: 0.0.40
codegen_flags: <defaults>
</compile_context>

<pallas_src>
import functools

import jax
import jax.numpy as jnp
import numpy as np
from jax.experimental import pallas as pl
from jax.experimental.pallas import tpu as pltpu


def _round_up(v, m):
    return ((v + m - 1) // m) * m


def _pick_div_tile(size, candidates):
    for c in candidates:
        if size % c == 0:
            return c
    return candidates[-1]


@functools.lru_cache(maxsize=None)
def _vmem_budget_bytes():
    # Generation-aware scoped-VMEM budget (v7x: 64 MiB/TC; v5e/v6e: 128 MiB).
    cap = 64 * 1024 * 1024
    try:
        info = pltpu.get_tpu_info()
        cap = int(getattr(info, "vmem_capacity_bytes", cap))
    except Exception:
        pass
    return max(32 * 1024 * 1024, min(cap * 3 // 4, 96 * 1024 * 1024))


# ----------------------------------------------------------------------------
# Pallas kernels: fused matmul + BN(scale/shift) + residual / ReLU epilogue
# ----------------------------------------------------------------------------
# 2-D grid (full-K tile) variants -- no accumulator scratch, no pl.when.
def _mm2d_kernel(a_ref, b_ref, sc_ref, sh_ref, o_ref, *, relu):
    acc = jnp.dot(a_ref[...], b_ref[...], preferred_element_type=jnp.float32)
    y = acc * sc_ref[...] + sh_ref[...]
    if relu:
        y = jnp.maximum(y, 0.0)
    o_ref[...] = y.astype(o_ref.dtype)


def _mm2d_res_kernel(a_ref, b_ref, sc_ref, sh_ref, res_ref, o_ref, *, relu):
    acc = jnp.dot(a_ref[...], b_ref[...], preferred_element_type=jnp.float32)
    y = acc * sc_ref[...] + sh_ref[...] + res_ref[...].astype(jnp.float32)
    if relu:
        y = jnp.maximum(y, 0.0)
    o_ref[...] = y.astype(o_ref.dtype)


def _mm2d_mask_kernel(a_ref, b_ref, sc_ref, sh_ref, rm_ref, o_ref):
    acc = jnp.dot(a_ref[...], b_ref[...], preferred_element_type=jnp.float32)
    y = acc * sc_ref[...] + sh_ref[...]
    y = jnp.where(rm_ref[...] > 0.5, jnp.maximum(y, 0.0), y)
    o_ref[...] = y.astype(o_ref.dtype)


# 3-D grid (K-split) fallback variants with a VMEM f32 accumulator.
def _mm3d_kernel(a_ref, b_ref, sc_ref, sh_ref, o_ref, acc_ref, *, relu):
    @pl.when(pl.program_id(2) == 0)
    def _():
        acc_ref[...] = jnp.zeros_like(acc_ref)

    acc_ref[...] += jnp.dot(a_ref[...], b_ref[...],
                            preferred_element_type=jnp.float32)

    @pl.when(pl.program_id(2) == pl.num_programs(2) - 1)
    def _():
        y = acc_ref[...] * sc_ref[...] + sh_ref[...]
        if relu:
            y = jnp.maximum(y, 0.0)
        o_ref[...] = y.astype(o_ref.dtype)


def _mm3d_res_kernel(a_ref, b_ref, sc_ref, sh_ref, res_ref, o_ref, acc_ref,
                     *, relu):
    @pl.when(pl.program_id(2) == 0)
    def _():
        acc_ref[...] = jnp.zeros_like(acc_ref)

    acc_ref[...] += jnp.dot(a_ref[...], b_ref[...],
                            preferred_element_type=jnp.float32)

    @pl.when(pl.program_id(2) == pl.num_programs(2) - 1)
    def _():
        y = acc_ref[...] * sc_ref[...] + sh_ref[...]
        y = y + res_ref[...].astype(jnp.float32)
        if relu:
            y = jnp.maximum(y, 0.0)
        o_ref[...] = y.astype(o_ref.dtype)


def _mm3d_mask_kernel(a_ref, b_ref, sc_ref, sh_ref, rm_ref, o_ref, acc_ref):
    @pl.when(pl.program_id(2) == 0)
    def _():
        acc_ref[...] = jnp.zeros_like(acc_ref)

    acc_ref[...] += jnp.dot(a_ref[...], b_ref[...],
                            preferred_element_type=jnp.float32)

    @pl.when(pl.program_id(2) == pl.num_programs(2) - 1)
    def _():
        y = acc_ref[...] * sc_ref[...] + sh_ref[...]
        y = jnp.where(rm_ref[...] > 0.5, jnp.maximum(y, 0.0), y)
        o_ref[...] = y.astype(o_ref.dtype)


@functools.lru_cache(maxsize=None)
def _build_matmul(mp, kp, np_, tm, tk, tn, relu, variant, out_dtype, vmem_limit):
    """variant in ('plain', 'res', 'mask'); tk == kp -> 2-D grid (full-K)."""
    out_itemsize = np.dtype(out_dtype).itemsize
    extra_bytes = 2 * np_ * 4                       # scale + shift
    if variant == "res":
        extra_bytes += mp * np_ * 2
    elif variant == "mask":
        extra_bytes += np_ * 4
    cost = pl.CostEstimate(
        flops=2 * mp * np_ * kp,
        transcendentals=0,
        bytes_accessed=(mp * kp + kp * np_) * 2 + extra_bytes
                       + mp * np_ * out_itemsize,
    )

    if tk == kp:                                    # ---- full-K, 2-D grid ----
        grid = (mp // tm, np_ // tn)
        a_spec = pl.BlockSpec((tm, kp), lambda i, j: (i, 0))
        b_spec = pl.BlockSpec((kp, tn), lambda i, j: (0, j))
        v_spec = pl.BlockSpec((1, tn), lambda i, j: (0, j))
        r_spec = pl.BlockSpec((tm, tn), lambda i, j: (i, j))
        o_spec = pl.BlockSpec((tm, tn), lambda i, j: (i, j))
        scratch = []
        semantics = ("parallel", "parallel")
        if variant == "plain":
            kern = functools.partial(_mm2d_kernel, relu=relu)
            in_specs = [a_spec, b_spec, v_spec, v_spec]
        elif variant == "res":
            kern = functools.partial(_mm2d_res_kernel, relu=relu)
            in_specs = [a_spec, b_spec, v_spec, v_spec, r_spec]
        else:
            kern = _mm2d_mask_kernel
            in_specs = [a_spec, b_spec, v_spec, v_spec, v_spec]
    else:                                           # ---- K-split fallback ----
        grid = (mp // tm, np_ // tn, kp // tk)
        a_spec = pl.BlockSpec((tm, tk), lambda i, j, k: (i, k))
        b_spec = pl.BlockSpec((tk, tn), lambda i, j, k: (k, j))
        v_spec = pl.BlockSpec((1, tn), lambda i, j, k: (0, j))
        r_spec = pl.BlockSpec((tm, tn), lambda i, j, k: (i, j))
        o_spec = pl.BlockSpec((tm, tn), lambda i, j, k: (i, j))
        scratch = [pltpu.VMEM((tm, tn), jnp.float32)]
        semantics = ("parallel", "parallel", "arbitrary")
        if variant == "plain":
            kern = functools.partial(_mm3d_kernel, relu=relu)
            in_specs = [a_spec, b_spec, v_spec, v_spec]
        elif variant == "res":
            kern = functools.partial(_mm3d_res_kernel, relu=relu)
            in_specs = [a_spec, b_spec, v_spec, v_spec, r_spec]
        else:
            kern = _mm3d_mask_kernel
            in_specs = [a_spec, b_spec, v_spec, v_spec, v_spec]

    return pl.pallas_call(
        kern,
        out_shape=jax.ShapeDtypeStruct((mp, np_), out_dtype),
        grid=grid,
        in_specs=in_specs,
        out_specs=o_spec,
        scratch_shapes=scratch,
        compiler_params=pltpu.CompilerParams(
            dimension_semantics=semantics,
            vmem_limit_bytes=vmem_limit,
        ),
        cost_estimate=cost,
    )


def fused_matmul(a, b_p, sc_p, sh_p, *, relu=False, residual=None,
                 relu_mask=None, out_dtype=jnp.bfloat16):
    """act((A @ B) * scale + shift [+ residual]) with bf16 MXU operands.

    b_p / sc_p / sh_p / relu_mask are PRE-PADDED to 128-multiples at init.
    Returns the PADDED (mp, np_) result; caller slices the real region.
    """
    m, k = a.shape
    kp, np_ = b_p.shape

    mp16 = _round_up(max(m, 1), 16)       # bf16 sublane packing = 16
    tm = min(256, mp16)
    mp = _round_up(m, tm)
    m_tiles = mp // tm

    tn = _pick_div_tile(np_, (512, 256, 128))
    # v7x megacore: expose >= 2 parallel tiles when the weight DMA is non-trivial.
    if m_tiles * (np_ // tn) < 2 and tn > 128 and kp * np_ * 2 >= (2 << 20):
        tn //= 2

    budget = _vmem_budget_bytes()
    out_itemsize = np.dtype(out_dtype).itemsize
    res_tile = tm * tn * 2 if residual is not None else (
        tn * 4 if relu_mask is not None else 0)
    fullk_bytes = 2 * (tm * kp * 2 + kp * tn * 2 + tm * tn * out_itemsize
                       + 2 * tn * 4 + res_tile)
    if fullk_bytes <= int(budget * 0.8):
        tk = kp                                          # collapse the K axis
    else:
        tk = _pick_div_tile(kp, (2048, 1024, 512, 256, 128))

    a = a.astype(jnp.bfloat16)
    if (mp, kp) != (m, k):
        a = jnp.pad(a, ((0, mp - m), (0, kp - k)))

    variant = "plain"
    args = [a, b_p, sc_p, sh_p]
    if residual is not None:
        variant = "res"
        r = residual.astype(jnp.bfloat16)
        rm_, rn_ = r.shape
        if (mp, np_) != (rm_, rn_):
            r = jnp.pad(r, ((0, mp - rm_), (0, np_ - rn_)))
        args.append(r)
    elif relu_mask is not None:
        variant = "mask"
        args.append(relu_mask)

    fn = _build_matmul(mp, kp, np_, tm, tk, tn, bool(relu), variant,
                       out_dtype, budget)
    return fn(*args)


# ----------------------------------------------------------------------------
# JAX glue: im2col, pooling, parameter construction
# ----------------------------------------------------------------------------
def im2col(x, kh, kw, stride, pad):
    """x: NHWC -> (B*Ho*Wo, kh*kw*C) patches (HWIO flattening order)."""
    # TODO(synk): 3x3/7x7 convs still materialize im2col patches in HBM; an
    # implicit-GEMM path (kh*kw folded into K via Element/manual-DMA indexing)
    # would remove the kh*kw activation expansion.
    b, h, w, c = x.shape
    ho = (h + 2 * pad - kh) // stride + 1
    wo = (w + 2 * pad - kw) // stride + 1
    if kh == 1 and kw == 1 and pad == 0:
        xs = x if stride == 1 else x[:, ::stride, ::stride, :]
        return xs.reshape(b * ho * wo, c), (b, ho, wo)
    xp = jnp.pad(x, ((0, 0), (pad, pad), (pad, pad), (0, 0)))
    cols = [xp[:, di:di + stride * ho:stride, dj:dj + stride * wo:stride, :]
            for di in range(kh) for dj in range(kw)]
    patches = jnp.concatenate(cols, axis=-1).reshape(b * ho * wo, c * kh * kw)
    return patches, (b, ho, wo)


def conv_bn(x, p, kh, kw, stride, pad, relu, residual=None):
    patches, (b, ho, wo) = im2col(x, kh, kw, stride, pad)
    m = b * ho * wo
    res2d = None
    if residual is not None:
        res2d = residual.reshape(m, residual.shape[-1])
    y = fused_matmul(patches, p["w"], p["scale"], p["shift"], relu=relu,
                     residual=res2d)
    return y[:m, :p["n"]].reshape(b, ho, wo, p["n"])


def maxpool_3x3_s2_p1(x):
    # TODO(synk): maxpool window-max kept as plain-JAX glue (tiny fraction of compute).
    b, h, w, c = x.shape
    stride, pad, k = 2, 1, 3
    ho = (h + 2 * pad - k) // stride + 1
    wo = (w + 2 * pad - k) // stride + 1
    xp = jnp.pad(x, ((0, 0), (pad, pad), (pad, pad), (0, 0)),
                 constant_values=-jnp.inf)
    out = None
    for di in range(k):
        for dj in range(k):
            s = xp[:, di:di + stride * ho:stride, dj:dj + stride * wo:stride, :]
            out = s if out is None else jnp.maximum(out, s)
    return out


def init_conv_bn(key, cin, cout, kh, kw):
    """Conv weight + folded eval-mode BN, pre-padded to 128-multiples, bf16/f32."""
    k1, k2, k3 = jax.random.split(key, 3)
    fan_in = cin * kh * kw
    w = jax.random.normal(k1, (fan_in, cout), jnp.float32) * np.sqrt(2.0 / fan_in)
    gamma = 1.0 + 0.1 * jax.random.normal(k2, (cout,), jnp.float32)
    beta = 0.05 * jax.random.normal(k3, (cout,), jnp.float32)
    running_mean = jnp.zeros((cout,), jnp.float32)
    running_var = jnp.ones((cout,), jnp.float32)
    eps = 1e-5
    scale = gamma / jnp.sqrt(running_var + eps)
    shift = beta - running_mean * scale

    kp = _round_up(fan_in, 128)
    np_ = _round_up(cout, 128)
    w_p = jnp.pad(w.astype(jnp.bfloat16), ((0, kp - fan_in), (0, np_ - cout)))
    sc_p = jnp.pad(scale.reshape(1, cout), ((0, 0), (0, np_ - cout)))
    sh_p = jnp.pad(shift.reshape(1, cout), ((0, 0), (0, np_ - cout)))
    return {"w": w_p, "scale": sc_p, "shift": sh_p, "k": fan_in, "n": cout}


# ResNet-101 layer config: (bottleneck width, num blocks, first-block stride)
_LAYERS = [(64, 3, 1), (128, 4, 2), (256, 23, 2), (512, 3, 2)]
_EXPANSION = 4


def make_params(key, num_classes, in_channels=16):
    keys = iter(jax.random.split(key, 256))
    params = {"stem": init_conv_bn(next(keys), in_channels, 64, 7, 7)}
    in_c = 64
    layers = []
    for width, nblocks, stride in _LAYERS:
        blocks = []
        for bi in range(nblocks):
            s = stride if bi == 0 else 1
            out_c = width * _EXPANSION
            block = {
                "stride": s,
                "c1": init_conv_bn(next(keys), in_c, width, 1, 1),
                "c2": init_conv_bn(next(keys), width, width, 3, 3),
                "c3": init_conv_bn(next(keys), width, out_c, 1, 1),
            }
            if s != 1 or in_c != out_c:
                # Fuse the 1x1 downsample conv with the 1x1 c1 conv (shared input):
                # concat weights/scale/shift along N; per-column ReLU mask so only
                # the c1 half gets the activation.
                down = init_conv_bn(next(keys), in_c, out_c, 1, 1)
                c1 = block["c1"]
                block["dc1"] = {
                    "w": jnp.concatenate([down["w"], c1["w"]], axis=1),
                    "scale": jnp.concatenate([down["scale"], c1["scale"]], axis=1),
                    "shift": jnp.concatenate([down["shift"], c1["shift"]], axis=1),
                    "rmask": jnp.concatenate(
                        [jnp.zeros((1, down["w"].shape[1]), jnp.float32),
                         jnp.ones((1, c1["w"].shape[1]), jnp.float32)], axis=1),
                    "n_down": down["n"],
                    "np_down": down["w"].shape[1],
                    "n_c1": c1["n"],
                }
                del block["c1"]
            blocks.append(block)
            in_c = out_c
        layers.append(blocks)
    params["layers"] = layers

    k1, k2 = jax.random.split(next(keys))
    n_ftrs = 512 * _EXPANSION
    ncp = _round_up(num_classes, 128)
    fc_w = jax.random.normal(k1, (n_ftrs, num_classes), jnp.float32) * 0.02
    fc_b = jax.random.normal(k2, (num_classes,), jnp.float32) * 0.01
    params["fc"] = {
        "w": jnp.pad(fc_w.astype(jnp.bfloat16), ((0, 0), (0, ncp - num_classes))),
        "scale": jnp.pad(jnp.ones((1, num_classes), jnp.float32),
                         ((0, 0), (0, ncp - num_classes))),
        "shift": jnp.pad(fc_b.reshape(1, num_classes),
                         ((0, 0), (0, ncp - num_classes))),
        "n": num_classes,
    }
    return params


def bottleneck(x, p):
    s = p["stride"]
    if "dc1" in p:
        dc = p["dc1"]
        b, h, w, c = x.shape
        m = b * h * w
        y = fused_matmul(x.reshape(m, c), dc["w"], dc["scale"], dc["shift"],
                         relu_mask=dc["rmask"])
        identity = y[:m, :dc["n_down"]].reshape(b, h, w, dc["n_down"])
        out = y[:m, dc["np_down"]:dc["np_down"] + dc["n_c1"]]
        out = out.reshape(b, h, w, dc["n_c1"])
        if s != 1:
            # 1x1 conv commutes with spatial subsampling.
            identity = identity[:, ::s, ::s, :]
    else:
        identity = x
        out = conv_bn(x, p["c1"], 1, 1, 1, 0, relu=True)
    out = conv_bn(out, p["c2"], 3, 3, s, 1, relu=True)
    # Residual add + ReLU fused into the c3 matmul epilogue.
    out = conv_bn(out, p["c3"], 1, 1, 1, 0, relu=True, residual=identity)
    return out


def res101_forward(params, image_nchw):
    """Matches RES_101.forward: returns (logits, None, None)."""
    x = jnp.transpose(image_nchw, (0, 2, 3, 1)).astype(jnp.bfloat16)  # NCHW->NHWC
    x = conv_bn(x, params["stem"], 7, 7, stride=2, pad=3, relu=True)
    x = maxpool_3x3_s2_p1(x)
    for layer_blocks in params["layers"]:
        for block in layer_blocks:
            x = bottleneck(x, block)
    x = jnp.mean(x.astype(jnp.float32), axis=(1, 2))        # global average pool
    fc = params["fc"]
    y = fused_matmul(x, fc["w"], fc["scale"], fc["shift"], relu=False,
                     out_dtype=jnp.float32)
    logits = y[:x.shape[0], :fc["n"]]
    return (logits, None, None)


if __name__ == "__main__":
    num_classes = 10
    key = jax.random.PRNGKey(0)
    pkey, xkey = jax.random.split(key)

    params = make_params(pkey, num_classes=num_classes, in_channels=16)
    # Small NCHW input consistent with the modified conv1 (16 input channels).
    image = jax.random.normal(xkey, (2, 16, 32, 32), jnp.float32)

    logits, aux1, aux2 = res101_forward(params, image)
    logits = jax.block_until_ready(logits)

    assert logits.shape == (2, num_classes), logits.shape
    assert aux1 is None and aux2 is None
    assert bool(jnp.all(jnp.isfinite(logits)))
    print("KERNEL_OK")
</pallas_src>

<mosaic_0001>
module attributes {stable_mosaic.version = 11 : i64} {
  func.func @_mm2d_kernel(%arg0: i32, %arg1: i32, %arg2: memref<256x896xbf16, #tpu.memory_space<vmem>>, %arg3: memref<896x128xbf16, #tpu.memory_space<vmem>>, %arg4: memref<1x128xf32, #tpu.memory_space<vmem>>, %arg5: memref<1x128xf32, #tpu.memory_space<vmem>>, %arg6: memref<256x128xbf16, #tpu.memory_space<vmem>>) attributes {dimension_semantics = [#tpu.dimension_semantics<parallel>, #tpu.dimension_semantics<parallel>], iteration_bounds = array<i64: 2, 1>, scalar_prefetch = 0 : i64, scratch_operands = 0 : i64, tpu.core_type = #tpu.core_type<tc>, window_params = [{transform_indices = @transform_0, window_bounds = array<i64: 256, 896>}, {transform_indices = @transform_1, window_bounds = array<i64: 896, 128>}, {transform_indices = @transform_2, window_bounds = array<i64: 1, 128>}, {transform_indices = @transform_3, window_bounds = array<i64: 1, 128>}, {transform_indices = @transform_4, window_bounds = array<i64: 256, 128>}]} {
    %c0 = arith.constant 0 : index
    %c0_0 = arith.constant 0 : index
    %0 = vector.load %arg2[%c0, %c0_0] : memref<256x896xbf16, #tpu.memory_space<vmem>>, vector<256x896xbf16>
    %c0_1 = arith.constant 0 : index
    %c0_2 = arith.constant 0 : index
    %1 = vector.load %arg3[%c0_1, %c0_2] : memref<896x128xbf16, #tpu.memory_space<vmem>>, vector<896x128xbf16>
    %cst = arith.constant dense<0.000000e+00> : vector<256x128xf32>
    %2 = tpu.matmul %0, %1, %cst {dimension_numbers = #tpu.dot_dimension_numbers<[1], [0], [0], [1], [0, 0, 1, 1], [], []>} : vector<256x896xbf16>, vector<896x128xbf16>, vector<256x128xf32> -> vector<256x128xf32>
    %c0_3 = arith.constant 0 : index
    %c0_4 = arith.constant 0 : index
    %3 = vector.load %arg4[%c0_3, %c0_4] : memref<1x128xf32, #tpu.memory_space<vmem>>, vector<1x128xf32>
    %4 = vector.broadcast %3 : vector<1x128xf32> to vector<256x128xf32>
    %5 = arith.mulf %2, %4 : vector<256x128xf32>
    %c0_5 = arith.constant 0 : index
    %c0_6 = arith.constant 0 : index
    %6 = vector.load %arg5[%c0_5, %c0_6] : memref<1x128xf32, #tpu.memory_space<vmem>>, vector<1x128xf32>
    %7 = vector.broadcast %6 : vector<1x128xf32> to vector<256x128xf32>
    %8 = arith.addf %5, %7 : vector<256x128xf32>
    %cst_7 = arith.constant 0.000000e+00 : f32
    %9 = vector.broadcast %cst_7 : f32 to vector<256x128xf32>
    %10 = arith.maximumf %8, %9 : vector<256x128xf32>
    %11 = arith.truncf %10 : vector<256x128xf32> to vector<256x128xbf16>
    %c0_8 = arith.constant 0 : index
    %c0_9 = arith.constant 0 : index
    %12 = vector.load %arg6[%c0_8, %c0_9] : memref<256x128xbf16, #tpu.memory_space<vmem>>, vector<256x128xbf16>
    tpu.vector_store %arg6[%c0_8, %c0_9], %11 {strides = array<i32>} : memref<256x128xbf16, #tpu.memory_space<vmem>>, vector<256x128xbf16>,
    return
  }
  func.func @transform_0(%arg0: i32, %arg1: i32) -> (i32, i32) {
    %c0_i32 = arith.constant 0 : i32
    %c0_i32_0 = arith.constant 0 : i32
    return %arg0, %c0_i32 : i32, i32
  }
  func.func @transform_1(%arg0: i32, %arg1: i32) -> (i32, i32) {
    %c0_i32 = arith.constant 0 : i32
    %c0_i32_0 = arith.constant 0 : i32
    return %c0_i32, %arg1 : i32, i32
  }
  func.func @transform_2(%arg0: i32, %arg1: i32) -> (i32, i32) {
    %c0_i32 = arith.constant 0 : i32
    %c0_i32_0 = arith.constant 0 : i32
    return %c0_i32, %arg1 : i32, i32
  }
  func.func @transform_3(%arg0: i32, %arg1: i32) -> (i32, i32) {
    %c0_i32 = arith.constant 0 : i32
    %c0_i32_0 = arith.constant 0 : i32
    return %c0_i32, %arg1 : i32, i32
  }
  func.func @transform_4(%arg0: i32, %arg1: i32) -> (i32, i32) {
    %c0_i32 = arith.constant 0 : i32
    return %arg0, %arg1 : i32, i32
  }
}

</mosaic_0001>

<bundles_post_ra>
// kernel: tpu_custom_call.1
= control target key start
LH: loop header
LB: loop body
LE: loop exit
PB: predicated region body
PF: predicated region fallthrough
CT: control target
= control target key end

     0   :  { %9 = vsyncpa [#allocation3], 0  ;;  %s4372_s0 = inlined_call_operand.hbm [shape: bf16[512,896], index: 0, kind: input, shape index: {}]   ;;  %s4373_s1 = inlined_call_operand.hbm [shape: bf16[896,128], index: 1, kind: input, shape index: {}]   ;;  %s4374_s2 = inlined_call_operand.vmem [shape: f32[1,128], index: 2, kind: input, shape index: {}]   ;;  %s4375_s3 = inlined_call_operand.vmem [shape: f32[1,128], index: 3, kind: input, shape index: {}]   ;;  %s4376_s4 = inlined_call_operand.hbm [shape: bf16[512,128], index: 4, kind: output, shape index: {}]  }
   0x1   :  { %11 = vsyncpa [#allocation3 + $0x1], 0 }
   0x2   :  { %12 = vsyncpa [#allocation6], 0 }
   0x3   :  { %13 = vsyncpa [#allocation4], 0 }
   0x4   :  { %15 = vsyncpa [#allocation4 + $0x1], 0  ;;  %s3728_s15 = smov 0   ;;  %s3730_s16 = smov 0  }
   0x5   :  { %s3732_s17 = smov 0   ;;  %s3734_s18 = smov 0  }
   0x6   :  { %s3736_s19 = smov 0   ;;  %s3738_s20 = smov 0  }
   0x7 LB: > { %s2484_s21 = sadd.s32 4294967295, %s3692_s20   ;;  %s2485_s22 = sadd.s32 4294967294, %s3692_s20   ;;  %s3692_s20 = sphi %s3738_s20, %s21_s20   ;;  %s3688_s19 = sphi %s3736_s19, %s4412_s19   ;;  %s3684_s18 = sphi %s3734_s18, %s4411_s18   ;;  %s3680_s17 = sphi %s3732_s17, %s4410_s17   ;;  %s3676_s16 = sphi %s3730_s16, %s4409_s16   ;;  %s3672_s15 = sphi %s3728_s15, %s4408_s15  }
   0x8   : > { %p53_p0 = scmp.ne.s32.totalorder %s3676_s16, %s3672_s15  ;;  %p3762_p1 = scmp.eq.s32.totalorder %s2484_s21, 0 }
   0x9   : > { %p3766_p2 = scmp.eq.s32.totalorder %s2484_s21, 1  ;;  %p163_p3 = scmp.eq.s32.totalorder %s2485_s22, 1 }
   0xa   : > { %p3772_p4 = por %p3762_p1, %p53_p0  ;;  %p2486_p5 = scmp.ge.s32.totalorder %s3692_s20, 1 }
   0xb   : > { %p3777_p6 = por %p163_p3, %p53_p0  ;;  %p170_p7 = scmp.lt.s32.totalorder %s3692_s20, 3 }
   0xc   : > { %s4380_s25 = scalar_select %p3772_p4, 1, 0 }
   0xd   : > { %s4381_s26 = scalar_select %p3777_p6, 1, 0 }
   0xe   : > { %p3782_p8 = pnand %p2486_p5, %p170_p7  ;;  %s3694_s28 = smov [#allocation5]  }
   0xf   : > { %s184_s29 = sshll.u32 %s3694_s28, 4  ;;  %p2490_p10 = scmp.ge.s32.totalorder %s3692_s20, 2  ;;  %s185_s29 = int_to_ptr.vmem [resolvable:$true] %s184_s29 }
  0x10   : > { %p3267_p9 = pneg %p3782_p8  ;;  %s33_s5 = sadd.s32 1, %s3688_s19 }
  0x11   : > { %s3565_s6 = scalar_lea.vmem %s185_s29, 7168  ;;  %p3573_p5 = scmp.lt.s32.totalorder %s185_s29, %s185_s29 }
  0x12   : > { %p3791_p11 = pnand %p3267_p9, %p3762_p1  ;;  %p3566_p13 = scmp.ne.s32.totalorder %s185_s29, %s3565_s6 }
  0x13   : > { %p3574_p7 = scmp.lt.s32.totalorder %s3565_s6, %s3565_s6 }
  0x14   : > { %p3556_p12 = pneg %p3791_p11 }
  0x15   : > { %p3575_p6 = por %p3574_p7, %p3573_p5 }
  0x16   : > { %p3568_p0 = pnand %p3566_p13, %p3556_p12 }
  0x18   : > { %p3569_p3 = pneg %p3568_p0 }
  0x1a   : > { %p3576_p4 = pnand %p3575_p6, %p3569_p3 }
  0x1c   : > { %3579 = shalt.err (!%p3576_p4)
}
  0x1d   : > { %s3695_s7 = smov 64   ;;  %s3696_s8 = smov 4  }
  0x1e   : > { %3270 = dma.hbm_to_vmem [thread:$0]  (!%p3791_p11), %s4373_s1, 7168, %s185_s29, [#allocation6], %s3695_s7, %s3695_s7, %s3696_s8  }
  0x1f   : > { %p35_p6 = scmp.ge.s32.totalorder %s33_s5, 2  ;;  %s40_s11 = sadd.s32 1, %s3680_s17 }
  0x20   : > { %p47_p4 = scmp.ne.s32.totalorder %s3680_s17, %s3676_s16  ;;  %p48_p9 = scmp.eq.s32.totalorder %s3692_s20, 0 }
  0x21   : > { %s4414_s5 = smov (%p35_p6, %s33_s5), 0  ;;  %p3280_p0 = scmp.lt.s32.totalorder %s3692_s20, 2 }
  0x22   : > { %p49_p12 = por %p48_p9, %p47_p4  ;;  %p3811_p13 = por %p3766_p2, %p47_p4 }
  0x23   : > { %s37_s13 = ssub.s32 %s3688_s19, %s4414_s5  ;;  %s210_s14 = sand.u32 1, %s3680_s17  }
  0x24   : > { %p38_p3 = scmp.eq.s32.totalorder %s37_s13, 0  ;;  %s3256_s21 = smul.u32 896, %s210_s14 }
  0x25   : > { %s3257_s28 = smul.u32 14336, %s3688_s19  ;;  %p3823_p11 = pnand %p3280_p0, %p49_p12 }
  0x26   : > { %s3820_s22 = scalar_select %p38_p3, %s3680_s17, %s40_s11  }
  0x27   : > { %s214_s29 = scalar_lea.vmem [#allocation2], %s3256_s21  ;;  %s221_s8 = scalar_lea.hbm %s4372_s0, %s3257_s28 }
  0x28   : > { %s222_s30 = sshll.u32 %s214_s29, 4  ;;  %s211_s9 = scalar_lea.sflag [#allocation3], %s210_s14  ;;  %s223_s30 = int_to_ptr.vmem [resolvable:$true] %s222_s30 }
  0x29   : > { %p3582_p2 = pneg %p3823_p11  ;;  %s3593_s10 = scalar_lea.vmem %s223_s30, 14336 }
  0x2a   : > { %p3594_p5 = scmp.ne.s32.totalorder %s223_s30, %s3593_s10  ;;  %s3697_s11 = smov [#allocation2]  }
  0x2b   : > { %s3598_s13 = sshll.u32 %s3697_s11, 4  ;;  %s3599_s13 = int_to_ptr.vmem [resolvable:$false] %s3598_s13 }
  0x2c   : > { %p3596_p7 = pnand %p3594_p5, %p3582_p2  ;;  %s3600_s21 = scalar_lea.vmem %s3599_s13, 28672 }
  0x2d   : > { %p3601_p4 = scmp.lt.s32.totalorder %s223_s30, %s3599_s13  ;;  %p3602_p9 = scmp.lt.s32.totalorder %s3600_s21, %s3593_s10 }
  0x2e   : > { %p3597_p6 = pneg %p3596_p7 }
  0x2f   : > { %p3603_p12 = por %p3602_p9, %p3601_p4 }
  0x31   : > { %p3604_p0 = pnand %p3603_p12, %p3597_p6 }
  0x33   : > { %3607 = shalt.err (!%p3604_p0)
}
  0x34   : > { %s3698_s29 = smov 448   ;;  %s3699_s28 = smov 28  }
  0x35   : > { %3274 = dma.hbm_to_vmem [thread:$0]  (!%p3823_p11), %s221_s8, 14336, %s223_s30, %s211_s9, %s3698_s29, %s3698_s29, %s3699_s28  }
  0x36   : > { %234 = sbr.rel (%p3782_p8) target bundleno = 542 (0x21e), region = 36 }
  0x3b   : > { %s3837_s14 = sand.u32 1, %s3676_s16   ;;  %p4386_p3 = scmp.ne.s32.totalorder %s4380_s25, 0 }
  0x3c   : > { %s3258_s7 = smul.u32 896, %s3837_s14  ;;  %s237_s24 = scalar_lea.sflag [#allocation3], %s3837_s14 }
  0x3e   : > { %s3841_s10 = scalar_lea.vmem [#allocation2], %s3258_s7 }
  0x3f   : > { %3659 = dma.done.wait (%p4386_p3), %s237_s24, 14336  }
  0x40   : > { %3661 = vsyncadd (%p4386_p3), %s237_s24, 4294952960 }
  0x41   : > { %3663 = dma.done.wait (%p3762_p1), [#allocation6], 7168  }
  0x42   : > { %3665 = vsyncadd (%p3762_p1), [#allocation6], 4294960128  ;;  %v3338_v0 = vld [vmem:[#allocation5 + $0x78] sm:$0xff]   ;;  %v3340_v2 = vld [vmem:[#allocation5 + $0x70] sm:$0xff]   ;;  %s2496_s6 = sshll.u32 %s3837_s14, 7  ;;  %s2736_s9 = sshll.u32 %s3684_s18, 11 }
  0x43   : > { %v3339_v1 = vld [vmem:[#allocation5 + $0x38] sm:$0xff]   ;;  %2832 = vmatprep.subr.bf16.mxu0 %v3338_v0  ;;  %3240 = vmatprep.subr.bf16.mxu1 %v3338_v0  ;;  %v3341_v3 = vld [vmem:[#allocation5 + $0x30] sm:$0xff]   ;;  %v3342_v4 = vld [vmem:[#allocation5 + $0x68] sm:$0xff]   ;;  %s4191_s8 = scalar_lea.vmem [#allocation7], %s2496_s6  ;;  %s4321_s29 = scalar_lea.hbm %s4376_s4, %s2736_s9 }
  0x44   : > { %2833 = vmatpush3.bf16.msra.mxu0 %v3339_v1  ;;  %3248 = vmatpush3.bf16.msra.mxu1 %v3339_v1  ;;  %v3343_v5 = vld [vmem:[#allocation5 + $0x28] sm:$0xff]   ;;  %v3344_v6 = vld [vmem:[#allocation5 + $0x60] sm:$0xff]   ;;  %v3346_v8 = vld [vmem:[#allocation5 + $0x58] sm:$0xff]   ;;  %s2365_s11 = sshll.u32 %s4191_s8, 4  ;;  %s2351_s28 = scalar_lea.sflag [#allocation4], %s3837_s14  ;;  %s4323_s11 = int_to_ptr.vmem [resolvable:$true] %s2365_s11 }
  0x45   : > { %2834 = vmatprep.subr.bf16.mxu0 %v3340_v2  ;;  %3241 = vmatprep.subr.bf16.mxu1 %v3340_v2  ;;  %v3345_v7 = vld [vmem:[#allocation5 + $0x20] sm:$0xff]   ;;  %v3347_v9 = vld [vmem:[#allocation5 + $0x18] sm:$0xff]   ;;  %v3348_v10 = vld [vmem:[#allocation5 + $0x50] sm:$0xff]   ;;  %s3608_s7 = scalar_lea.vmem %s4323_s11, 2048  ;;  %s3700_s18 = smov [#allocation7]  }
  0x46   : > { %v3356_v11 = vld [vmem:[%s3841_s10 + $0x4] ss:$28 sps:$4 sm:$0xff]   ;;  %v3349_v13 = vld [vmem:[#allocation5 + $0x10] sm:$0xff]   ;;  %v3350_v14 = vld [vmem:[#allocation5 + $0x48] sm:$0xff]   ;;  %p3609_p1 = scmp.ne.s32.totalorder %s4323_s11, %s3608_s7  ;;  %s3612_s24 = sshll.u32 %s3700_s18, 4  ;;  %s3613_s24 = int_to_ptr.vmem [resolvable:$false] %s3612_s24 }
  0x47   : > { %v3359_v12 = vld [vmem:[%s3841_s10 + $0x2a4] ss:$28 sps:$4 sm:$0xff]   ;;  %1468 = vmatprep.mubr.bf16.mxu0 %v3356_v11  ;;  %v3351_v15 = vld [vmem:[#allocation5 + $0x8] sm:$0xff]   ;;  %v3360_v18 = vld [vmem:[#allocation5 + $0xf8] sm:$0xff]   ;;  %p3615_p2 = scmp.lt.s32.totalorder %s4323_s11, %s3613_s24 }
  0x48   : > { %2835 = vmatpush3.bf16.msra.mxu0 %v3341_v3  ;;  %3249 = vmatpush3.bf16.msra.mxu1 %v3341_v3  ;;  %v3352_v16 = vld [vmem:[#allocation5 + $0x40] sm:$0xff]   ;;  %v3361_v21 = vld [vmem:[#allocation5 + $0x178] sm:$0xff]   ;;  %v3364_v24 = vld [vmem:[#allocation5 + $0xf0] sm:$0xff]   ;;  %p3610_p8 = pnand %p3609_p1, %p3811_p13 }
  0x49   : > { %2836 = vmatprep.subr.bf16.mxu0 %v3342_v4  ;;  %3242 = vmatprep.subr.bf16.mxu1 %v3342_v4  ;;  %v3353_v17 = vld [vmem:[#allocation5] sm:$0xff]   ;;  %v3362_v22 = vld [vmem:[#allocation5 + $0xb8] sm:$0xff]   ;;  %v3375_v27 = vld [vmem:[#allocation5 + $0x170] sm:$0xff]  }
  0x4a   : > { %1564 = vmatprep.mubr.bf16.mxu1 %v3359_v12  ;;  %v3354_v19 = vld [vmem:[%s3841_s10] ss:$28 sps:$4 sm:$0xff]   ;;  %v3365_v28 = vld [vmem:[#allocation5 + $0xb0] sm:$0xff]   ;;  %v3372_v32 = vld [vmem:[#allocation5 + $0xe8] sm:$0xff]   ;;  %p3611_p11 = pneg %p3610_p8 }
  0x4b   : > { %v3357_v20 = vld [vmem:[%s3841_s10 + $0x2a0] ss:$28 sps:$4 sm:$0xff]   ;;  %v3377_v29 = vld [vmem:[#allocation5 + $0x130] sm:$0xff]   ;;  %v3373_v33 = vld [vmem:[#allocation5 + $0xa8] sm:$0xff]  }
  0x4c   : > { %2837 = vmatpush3.bf16.msra.mxu0 %v3343_v5  ;;  %3250 = vmatpush3.bf16.msra.mxu1 %v3343_v5  ;;  %v3363_v23 = vld [vmem:[#allocation5 + $0x138] sm:$0xff]   ;;  %v3374_v34 = vld [vmem:[#allocation5 + $0xe0] sm:$0xff]   ;;  %v3378_v35 = vld [vmem:[%s3841_s10 + $0x74] ss:$28 sps:$4 sm:$0xff]  }
  0x4d   : > { %2838 = vmatprep.subr.bf16.mxu0 %v3344_v6  ;;  %3243 = vmatprep.subr.bf16.mxu1 %v3344_v6  ;;  %v3366_v25 = vld [vmem:[%s3841_s10 + $0x3c] ss:$28 sps:$4 sm:$0xff]   ;;  %v3380_v36 = vld [vmem:[%s3841_s10 + $0x314] ss:$28 sps:$4 sm:$0xff]   ;;  %v3376_v37 = vld [vmem:[#allocation5 + $0xa0] sm:$0xff]  }
  0x4e   : > { %v3368_v26 = vld [vmem:[%s3841_s10 + $0x2dc] ss:$28 sps:$4 sm:$0xff]   ;;  %v3382_v39 = vld [vmem:[%s3841_s10 + $0x70] ss:$28 sps:$4 sm:$0xff]   ;;  %v3392_v49 = vld [vmem:[%s3841_s10 + $0xa8] ss:$28 sps:$4 sm:$0xff]  }
  0x4f   : > { %v3370_v30 = vld [vmem:[%s3841_s10 + $0x38] ss:$28 sps:$4 sm:$0xff]   ;;  %v3383_v40 = vld [vmem:[%s3841_s10 + $0x310] ss:$28 sps:$4 sm:$0xff]   ;;  %v3393_v50 = vld [vmem:[%s3841_s10 + $0x348] ss:$28 sps:$4 sm:$0xff]  }
  0x50   : > { %2839 = vmatpush3.bf16.msra.mxu0 %v3345_v7  ;;  %3251 = vmatpush3.bf16.msra.mxu1 %v3345_v7  ;;  %v3371_v31 = vld [vmem:[%s3841_s10 + $0x2d8] ss:$28 sps:$4 sm:$0xff]   ;;  %v3395_v41 = vld [vmem:[#allocation5 + $0x168] sm:$0xff]   ;;  %v3406_v51 = vld [vmem:[#allocation5 + $0x160] sm:$0xff]  }
  0x51   : > { %2840 = vmatprep.subr.bf16.mxu0 %v3346_v8  ;;  %3244 = vmatprep.subr.bf16.mxu1 %v3346_v8  ;;  %v3384_v38 = vld [vmem:[#allocation5 + $0xd8] sm:$0xff]   ;;  %v3386_v43 = vld [vmem:[#allocation5 + $0xd0] sm:$0xff]   ;;  %v3397_v44 = vld [vmem:[#allocation5 + $0x128] sm:$0xff]  }
  0x52   : > { %v3385_v42 = vld [vmem:[#allocation5 + $0x98] sm:$0xff]   ;;  %v3388_v45 = vld [vmem:[%s3841_s10 + $0xac] ss:$28 sps:$4 sm:$0xff]   ;;  %v3387_v47 = vld [vmem:[#allocation5 + $0x90] sm:$0xff]  }
  0x53   : > { %v3390_v46 = vld [vmem:[%s3841_s10 + $0x34c] ss:$28 sps:$4 sm:$0xff]   ;;  %v3408_v53 = vld [vmem:[#allocation5 + $0x120] sm:$0xff]   ;;  %v3407_v58 = vld [vmem:[#allocation5 + $0x1b8] sm:$0xff]  }
  0x54   : > { %2841 = vmatpush3.bf16.msra.mxu0 %v3347_v9  ;;  %3252 = vmatpush3.bf16.msra.mxu1 %v3347_v9  ;;  %v3394_v48 = vld [vmem:[#allocation5 + $0xc8] sm:$0xff]   ;;  %v3400_v54 = vld [vmem:[%s3841_s10 + $0xe4] ss:$28 sps:$4 sm:$0xff]   ;;  %v3421_v60 = vld [vmem:[#allocation5 + $0x158] sm:$0xff]  }
  0x55   : > { %2842 = vmatprep.subr.bf16.mxu0 %v3348_v10  ;;  %3245 = vmatprep.subr.bf16.mxu1 %v3348_v10  ;;  %v3396_v52 = vld [vmem:[#allocation5 + $0x88] sm:$0xff]   ;;  %v3398_v55 = vld [vmem:[#allocation5 + $0xc0] sm:$0xff]   ;;  %v3422_v61 = vld [vmem:[#allocation5 + $0x118] sm:$0xff]  }
  0x56   : > { %v3404_v56 = vld [vmem:[%s3841_s10 + $0xc] ss:$28 sps:$4 sm:$0xff]   ;;  %v3399_v57 = vld [vmem:[#allocation5 + $0x80] sm:$0xff]   ;;  %v3409_v63 = vld [vmem:[%s3841_s10 + $0x11c] ss:$28 sps:$4 sm:$0xff]  }
  0x57   : > { %v3402_v59 = vld [vmem:[%s3841_s10 + $0x8] ss:$28 sps:$4 sm:$0xff]   ;;  %v3405_v62 = vld [vmem:[%s3841_s10 + $0xe0] ss:$28 sps:$4 sm:$0xff]   ;;  %v3423_v1 = vld [vmem:[#allocation5 + $0x1b0] sm:$0xff]  }
  0x58   : > { %2843 = vmatpush3.bf16.msra.mxu0 %v3349_v13  ;;  %3253 = vmatpush3.bf16.msra.mxu1 %v3349_v13  ;;  %v3411_v0 = vld [vmem:[%s3841_s10 + $0x44] ss:$28 sps:$4 sm:$0xff]   ;;  %v3430_v2 = vld [vmem:[#allocation5 + $0x150] sm:$0xff]   ;;  %v3438_v7 = vld [vmem:[#allocation5 + $0x1a8] sm:$0xff]  }
  0x59   : > { %2844 = vmatprep.subr.bf16.mxu0 %v3350_v14  ;;  %3246 = vmatprep.subr.bf16.mxu1 %v3350_v14  ;;  %v3431_v3 = vld [vmem:[#allocation5 + $0x110] sm:$0xff]   ;;  %v3414_v5 = vld [vmem:[%s3841_s10 + $0x40] ss:$28 sps:$4 sm:$0xff]   ;;  %v3445_v9 = vld [vmem:[#allocation5 + $0x148] sm:$0xff]  }
  0x5a   : > { %v3413_v4 = vld [vmem:[%s3841_s10 + $0x118] ss:$28 sps:$4 sm:$0xff]   ;;  %v3446_v10 = vld [vmem:[#allocation5 + $0x108] sm:$0xff]  }
  0x5b   : > { %v3415_v6 = vld [vmem:[%s3841_s10 + $0x154] ss:$28 sps:$4 sm:$0xff]   ;;  %v3417_v8 = vld [vmem:[%s3841_s10 + $0x7c] ss:$28 sps:$4 sm:$0xff]   ;;  %v3424_v13 = vld [vmem:[%s3841_s10 + $0x18c] ss:$28 sps:$4 sm:$0xff]  }
  0x5c   : > { %2845 = vmatpush3.bf16.msra.mxu0 %v3351_v15  ;;  %3254 = vmatpush3.bf16.msra.mxu1 %v3351_v15  ;;  %v3419_v11 = vld [vmem:[%s3841_s10 + $0x150] ss:$28 sps:$4 sm:$0xff]   ;;  %v3420_v12 = vld [vmem:[%s3841_s10 + $0x78] ss:$28 sps:$4 sm:$0xff]   ;;  %v3453_v15 = vld [vmem:[#allocation5 + $0x140] sm:$0xff]  }
  0x5d   : > { %2846 = vmatprep.subr.bf16.mxu0 %v3352_v16  ;;  %3247 = vmatprep.subr.bf16.mxu1 %v3352_v16  ;;  %v3426_v14 = vld [vmem:[%s3841_s10 + $0xb4] ss:$28 sps:$4 sm:$0xff]   ;;  %v3454_v16 = vld [vmem:[#allocation5 + $0x1a0] sm:$0xff]  }
  0x60   : > { %2847 = vmatpush3.bf16.msra.mxu0 %v3353_v17  ;;  %3255 = vmatpush3.bf16.msra.mxu1 %v3353_v17  ;;  %v3455_v17 = vld [vmem:[#allocation5 + $0x100] sm:$0xff]  }
  0x61   : > { %2944 = vmatprep.subr.bf16.mxu1 %v3360_v18  ;;  %3056 = vmatprep.subr.bf16.mxu0 %v3361_v21  ;;  %v3428_v18 = vld [vmem:[%s3841_s10 + $0x188] ss:$28 sps:$4 sm:$0xff]  }
  0x62   : > { %v3434_v21 = vld [vmem:[%s3841_s10 + $0xec] ss:$28 sps:$4 sm:$0xff]  }
  0x63   : > { %1469 = vmatmul.mubr.bf16.vlgmr.msra.gmra.mxu0 %v3354_v19  ;;  %1565 = vmatmul.mubr.bf16.vlgmr.msra.gmra.mxu1 %v3357_v20  ;;  %v3429_v19 = vld [vmem:[%s3841_s10 + $0xb0] ss:$28 sps:$4 sm:$0xff]   ;;  %v3432_v20 = vld [vmem:[%s3841_s10 + $0x1c4] ss:$28 sps:$4 sm:$0xff]  }
  0x64   : > { %2945 = vmatpush3.bf16.msra.mxu1 %v3362_v22  ;;  %3057 = vmatpush3.bf16.msra.mxu0 %v3363_v23  ;;  %v3468_v22 = vld [vmem:[#allocation5 + $0x198] sm:$0xff]  }
  0x65   : > { %2946 = vmatprep.subr.bf16.mxu1 %v3364_v24  ;;  %1476 = vmatprep.mubr.bf16.mxu0 %v3366_v25  ;;  %v3436_v23 = vld [vmem:[%s3841_s10 + $0x1c0] ss:$28 sps:$4 sm:$0xff]   ;;  %v3437_v24 = vld [vmem:[%s3841_s10 + $0xe8] ss:$28 sps:$4 sm:$0xff]   ;;  %v3481_v25 = vld [vmem:[#allocation5 + $0x190] sm:$0xff]  }
  0x66   : > { %1572 = vmatprep.mubr.bf16.mxu1 %v3368_v26  ;;  %3058 = vmatprep.subr.bf16.mxu0 %v3375_v27  ;;  %v3439_v26 = vld [vmem:[%s3841_s10 + $0x1fc] ss:$28 sps:$4 sm:$0xff]   ;;  %v3441_v27 = vld [vmem:[%s3841_s10 + $0x124] ss:$28 sps:$4 sm:$0xff]  }
  0x68   : > { %2947 = vmatpush3.bf16.msra.mxu1 %v3365_v28  ;;  %3059 = vmatpush3.bf16.msra.mxu0 %v3377_v29  ;;  %v3494_v28 = vld [vmem:[#allocation5 + $0x188] sm:$0xff]   ;;  %v3443_v29 = vld [vmem:[%s3841_s10 + $0x1f8] ss:$28 sps:$4 sm:$0xff]  }
  0x69   : > { %2948 = vmatprep.subr.bf16.mxu1 %v3372_v32  ;;  %3060 = vmatprep.subr.bf16.mxu0 %v3395_v41  ;;  %v3449_v32 = vld [vmem:[%s3841_s10 + $0x15c] ss:$28 sps:$4 sm:$0xff]   ;;  %v3466_v41 = vld [vmem:[%s3841_s10 + $0x14] ss:$28 sps:$4 sm:$0xff]  }
  0x6b   : > { %1477 = vmatmul.mubr.bf16.gmra.mxu0 %v3370_v30  ;;  %1573 = vmatmul.mubr.bf16.gmra.mxu1 %v3371_v31  ;;  %v3444_v30 = vld [vmem:[%s3841_s10 + $0x120] ss:$28 sps:$4 sm:$0xff]   ;;  %v3447_v31 = vld [vmem:[%s3841_s10 + $0x234] ss:$28 sps:$4 sm:$0xff]  }
  0x6c   : > { %2949 = vmatpush3.bf16.msra.mxu1 %v3373_v33  ;;  %1484 = vmatprep.mubr.bf16.mxu0 %v3378_v35  ;;  %v3507_v33 = vld [vmem:[#allocation5 + $0x180] sm:$0xff]   ;;  %v3452_v35 = vld [vmem:[%s3841_s10 + $0x158] ss:$28 sps:$4 sm:$0xff]  }
  0x6d   : > { %2950 = vmatprep.subr.bf16.mxu1 %v3374_v34  ;;  %1580 = vmatprep.mubr.bf16.mxu1 %v3380_v36  ;;  %v3451_v34 = vld [vmem:[%s3841_s10 + $0x230] ss:$28 sps:$4 sm:$0xff]  }
  0x6e   : > { %3061 = vmatpush3.bf16.msra.mxu0 %v3397_v44  ;;  %v3456_v36 = vld [vmem:[%s3841_s10 + $0x26c] ss:$28 sps:$4 sm:$0xff]   ;;  %v3469_v44 = vld [vmem:[%s3841_s10 + $0x204] ss:$28 sps:$4 sm:$0xff]  }
  0x6f   : > { %3062 = vmatprep.subr.bf16.mxu0 %v3406_v51  ;;  %v3480_v51 = vld [vmem:[%s3841_s10 + $0x80] ss:$28 sps:$4 sm:$0xff]  }
  0x70   : > { %2951 = vmatpush3.bf16.msra.mxu1 %v3376_v37  ;;  %v3458_v37 = vld [vmem:[%s3841_s10 + $0x194] ss:$28 sps:$4 sm:$0xff]  }
  0x71   : > { %2952 = vmatprep.subr.bf16.mxu1 %v3384_v38  ;;  %v3460_v38 = vld [vmem:[%s3841_s10 + $0x268] ss:$28 sps:$4 sm:$0xff]  }
  0x72   : > { %3063 = vmatpush3.bf16.msra.mxu0 %v3408_v53  ;;  %v3484_v53 = vld [vmem:[%s3841_s10 + $0xbc] ss:$28 sps:$4 sm:$0xff]  }
  0x73   : > { %1485 = vmatmul.mubr.bf16.gmra.mxu0 %v3382_v39  ;;  %1581 = vmatmul.mubr.bf16.gmra.mxu1 %v3383_v40  ;;  %v3461_v39 = vld [vmem:[%s3841_s10 + $0x190] ss:$28 sps:$4 sm:$0xff]  }
  0x74   : > { %2953 = vmatpush3.bf16.msra.mxu1 %v3385_v42  ;;  %1492 = vmatprep.mubr.bf16.mxu0 %v3388_v45  ;;  %v3462_v40 = vld [vmem:[%s3841_s10 + $0x1cc] ss:$28 sps:$4 sm:$0xff]  }
  0x75   : > { %2954 = vmatprep.subr.bf16.mxu1 %v3386_v43  ;;  %1588 = vmatprep.mubr.bf16.mxu1 %v3390_v46  ;;  %v3464_v42 = vld [vmem:[%s3841_s10 + $0x10] ss:$28 sps:$4 sm:$0xff]   ;;  %v3467_v43 = vld [vmem:[%s3841_s10 + $0x1c8] ss:$28 sps:$4 sm:$0xff]   ;;  %v3473_v46 = vld [vmem:[%s3841_s10 + $0x200] ss:$28 sps:$4 sm:$0xff]  }
  0x76   : > { %3064 = vmatprep.subr.bf16.mxu0 %v3421_v60  ;;  %v3471_v45 = vld [vmem:[%s3841_s10 + $0x4c] ss:$28 sps:$4 sm:$0xff]   ;;  %v3495_v60 = vld [vmem:[%s3841_s10 + $0x2e4] ss:$28 sps:$4 sm:$0xff]  }
  0x77   : > { %3065 = vmatpush3.bf16.msra.mxu0 %v3422_v61  ;;  %v3497_v61 = vld [vmem:[%s3841_s10 + $0x12c] ss:$28 sps:$4 sm:$0xff]  }
  0x78   : > { %2955 = vmatpush3.bf16.msra.mxu1 %v3387_v47  ;;  %3066 = vmatprep.subr.bf16.mxu0 %v3430_v2  ;;  %v3474_v47 = vld [vmem:[%s3841_s10 + $0x48] ss:$28 sps:$4 sm:$0xff]   ;;  %v3505_v2 = vld [vmem:[%s3841_s10 + $0x318] ss:$28 sps:$4 sm:$0xff]  }
  0x79   : > { %2956 = vmatprep.subr.bf16.mxu1 %v3394_v48  ;;  %v3475_v48 = vld [vmem:[%s3841_s10 + $0x23c] ss:$28 sps:$4 sm:$0xff]  }
  0x7b   : > { %1493 = vmatmul.mubr.bf16.gmra.mxu0 %v3392_v49  ;;  %1589 = vmatmul.mubr.bf16.gmra.mxu1 %v3393_v50  ;;  %v3477_v49 = vld [vmem:[%s3841_s10 + $0x84] ss:$28 sps:$4 sm:$0xff]   ;;  %v3479_v50 = vld [vmem:[%s3841_s10 + $0x238] ss:$28 sps:$4 sm:$0xff]  }
  0x7c   : > { %2957 = vmatpush3.bf16.msra.mxu1 %v3396_v52  ;;  %1500 = vmatprep.mubr.bf16.mxu0 %v3400_v54  ;;  %v3482_v52 = vld [vmem:[%s3841_s10 + $0x274] ss:$28 sps:$4 sm:$0xff]  }
  0x7d   : > { %2958 = vmatprep.subr.bf16.mxu1 %v3398_v55  ;;  %1629 = vmatprep.mubr.bf16.mxu1 %v3404_v56  ;;  %v3486_v54 = vld [vmem:[%s3841_s10 + $0x270] ss:$28 sps:$4 sm:$0xff]   ;;  %v3487_v55 = vld [vmem:[%s3841_s10 + $0xb8] ss:$28 sps:$4 sm:$0xff]  }
  0x7e   : > { %3067 = vmatpush3.bf16.msra.mxu0 %v3431_v3  ;;  %v3488_v56 = vld [vmem:[%s3841_s10 + $0x2ac] ss:$28 sps:$4 sm:$0xff]   ;;  %v3506_v3 = vld [vmem:[%s3841_s10 + $0x160] ss:$28 sps:$4 sm:$0xff]  }
  0x7f   : > { %3068 = vmatprep.subr.bf16.mxu0 %v3445_v9  ;;  %v3516_v9 = vld [vmem:[%s3841_s10 + $0x18] ss:$28 sps:$4 sm:$0xff]  }
  0x80   : > { %2959 = vmatpush3.bf16.msra.mxu1 %v3399_v57  ;;  %v3490_v57 = vld [vmem:[%s3841_s10 + $0xf4] ss:$28 sps:$4 sm:$0xff]  }
  0x81   : > { %3192 = vmatprep.subr.bf16.mxu1 %v3407_v58 }
  0x82   : > { %3069 = vmatpush3.bf16.msra.mxu0 %v3446_v10  ;;  %v3517_v10 = vld [vmem:[%s3841_s10 + $0x1d0] ss:$28 sps:$4 sm:$0xff]  }
  0x83   : > { %1501 = vmatmul.mubr.bf16.gmra.mxu0 %v3405_v62  ;;  %1630 = vmatmul.mubr.bf16.vlgmr.msra.gmra.mxu1 %v3402_v59  ;;  %v3493_v59 = vld [vmem:[%s3841_s10 + $0xf0] ss:$28 sps:$4 sm:$0xff]   ;;  %v3499_v62 = vld [vmem:[%s3841_s10 + $0x2e0] ss:$28 sps:$4 sm:$0xff]  }
  0x84   : > { %3193 = vmatpush3.bf16.msra.mxu1 %v3407_v58  ;;  %1508 = vmatprep.mubr.bf16.mxu0 %v3409_v63  ;;  %v3492_v58 = vld [vmem:[%s3841_s10 + $0x2a8] ss:$28 sps:$4 sm:$0xff]  }
  0x85   : > { %1637 = vmatprep.mubr.bf16.mxu1 %v3411_v0  ;;  %3194 = vmatprep.subr.bf16.mxu1 %v3423_v1  ;;  %v3500_v63 = vld [vmem:[%s3841_s10 + $0x128] ss:$28 sps:$4 sm:$0xff]   ;;  %v3501_v0 = vld [vmem:[%s3841_s10 + $0x31c] ss:$28 sps:$4 sm:$0xff]  }
  0x86   : > { %3070 = vmatprep.subr.bf16.mxu0 %v3453_v15  ;;  %v3523_v15 = vld [vmem:[%s3841_s10 + $0xc0] ss:$28 sps:$4 sm:$0xff]  }
  0x87   : > { %3071 = vmatpush3.bf16.msra.mxu0 %v3455_v17  ;;  %v3526_v17 = vld [vmem:[%s3841_s10 + $0xf8] ss:$28 sps:$4 sm:$0xff]  }
  0x88   : > { %3195 = vmatpush3.bf16.msra.mxu1 %v3423_v1  ;;  %v3503_v1 = vld [vmem:[%s3841_s10 + $0x164] ss:$28 sps:$4 sm:$0xff]  }
  0x89   : > { %3196 = vmatprep.subr.bf16.mxu1 %v3438_v7 }
  0x8b   : > { %1509 = vmatmul.mubr.bf16.gmra.mxu0 %v3413_v4  ;;  %1638 = vmatmul.mubr.bf16.gmra.mxu1 %v3414_v5  ;;  %v3508_v4 = vld [vmem:[%s3841_s10 + $0x354] ss:$28 sps:$4 sm:$0xff]   ;;  %v3510_v5 = vld [vmem:[%s3841_s10 + $0x19c] ss:$28 sps:$4 sm:$0xff]  }
  0x8c   : > { %1516 = vmatprep.mubr.bf16.mxu0 %v3415_v6  ;;  %1645 = vmatprep.mubr.bf16.mxu1 %v3417_v8  ;;  %v3512_v6 = vld [vmem:[%s3841_s10 + $0x350] ss:$28 sps:$4 sm:$0xff]  }
  0x8d   : > { %3197 = vmatpush3.bf16.msra.mxu1 %v3438_v7  ;;  %v3513_v7 = vld [vmem:[%s3841_s10 + $0x198] ss:$28 sps:$4 sm:$0xff]  }
  0x8e   : > { %3198 = vmatprep.subr.bf16.mxu1 %v3454_v16  ;;  %v3514_v8 = vld [vmem:[%s3841_s10 + $0x1d4] ss:$28 sps:$4 sm:$0xff]  }
  0x91   : > { %3199 = vmatpush3.bf16.msra.mxu1 %v3454_v16  ;;  %v3524_v16 = vld [vmem:[%s3841_s10 + $0x244] ss:$28 sps:$4 sm:$0xff]  }
  0x92   : > { %3200 = vmatprep.subr.bf16.mxu1 %v3468_v22 }
  0x93   : > { %1517 = vmatmul.mubr.bf16.gmra.mxu0 %v3419_v11  ;;  %1646 = vmatmul.mubr.bf16.gmra.mxu1 %v3420_v12  ;;  %v3518_v11 = vld [vmem:[%s3841_s10 + $0x50] ss:$28 sps:$4 sm:$0xff]  }
  0x94   : > { %1524 = vmatprep.mubr.bf16.mxu0 %v3424_v13  ;;  %1653 = vmatprep.mubr.bf16.mxu1 %v3426_v14  ;;  %v3519_v12 = vld [vmem:[%s3841_s10 + $0x20c] ss:$28 sps:$4 sm:$0xff]  }
  0x95   : > { %3201 = vmatpush3.bf16.msra.mxu1 %v3468_v22  ;;  %v3521_v13 = vld [vmem:[%s3841_s10 + $0x88] ss:$28 sps:$4 sm:$0xff]   ;;  %v3532_v22 = vld [vmem:[%s3841_s10 + $0x278] ss:$28 sps:$4 sm:$0xff]  }
  0x96   : > { %3202 = vmatprep.subr.bf16.mxu1 %v3481_v25  ;;  %v3522_v14 = vld [vmem:[%s3841_s10 + $0x208] ss:$28 sps:$4 sm:$0xff]  }
  0x99   : > { %3203 = vmatpush3.bf16.msra.mxu1 %v3481_v25  ;;  %v3536_v25 = vld [vmem:[%s3841_s10 + $0x1d8] ss:$28 sps:$4 sm:$0xff]  }
  0x9a   : > { %3204 = vmatprep.subr.bf16.mxu1 %v3494_v28 }
  0x9b   : > { %1525 = vmatmul.mubr.bf16.gmra.mxu0 %v3428_v18  ;;  %1654 = vmatmul.mubr.bf16.gmra.mxu1 %v3429_v19  ;;  %v3527_v18 = vld [vmem:[%s3841_s10 + $0x240] ss:$28 sps:$4 sm:$0xff]   ;;  %v3528_v19 = vld [vmem:[%s3841_s10 + $0x130] ss:$28 sps:$4 sm:$0xff]  }
  0x9c   : > { %1532 = vmatprep.mubr.bf16.mxu0 %v3432_v20  ;;  %1661 = vmatprep.mubr.bf16.mxu1 %v3434_v21  ;;  %v3529_v20 = vld [vmem:[%s3841_s10 + $0x27c] ss:$28 sps:$4 sm:$0xff]   ;;  %v3531_v21 = vld [vmem:[%s3841_s10 + $0x168] ss:$28 sps:$4 sm:$0xff]  }
  0x9d   : > { %3205 = vmatpush3.bf16.msra.mxu1 %v3494_v28  ;;  %v3539_v28 = vld [vmem:[%s3841_s10 + $0x2ec] ss:$28 sps:$4 sm:$0xff]  }
  0x9e   : > { %3206 = vmatprep.subr.bf16.mxu1 %v3507_v33 }
  0xa1   : > { %3207 = vmatpush3.bf16.msra.mxu1 %v3507_v33 }
  0xa3   : > { %1533 = vmatmul.mubr.bf16.gmra.mxu0 %v3436_v23  ;;  %1662 = vmatmul.mubr.bf16.gmra.mxu1 %v3437_v24  ;;  %v3533_v23 = vld [vmem:[%s3841_s10 + $0x1a0] ss:$28 sps:$4 sm:$0xff]   ;;  %v3534_v24 = vld [vmem:[%s3841_s10 + $0x2b4] ss:$28 sps:$4 sm:$0xff]  }
  0xa4   : > { %1540 = vmatprep.mubr.bf16.mxu0 %v3439_v26  ;;  %1669 = vmatprep.mubr.bf16.mxu1 %v3441_v27  ;;  %v3537_v26 = vld [vmem:[%s3841_s10 + $0x2b0] ss:$28 sps:$4 sm:$0xff]  }
  0xa5   : > { %v3538_v27 = vld [vmem:[%s3841_s10 + $0x210] ss:$28 sps:$4 sm:$0xff]  }
  0xab   : > { %1541 = vmatmul.mubr.bf16.gmra.mxu0 %v3443_v29  ;;  %1670 = vmatmul.mubr.bf16.gmra.mxu1 %v3444_v30  ;;  %v3541_v29 = vld [vmem:[%s3841_s10 + $0x248] ss:$28 sps:$4 sm:$0xff]  }
  0xac   : > { %1548 = vmatprep.mubr.bf16.mxu0 %v3447_v31  ;;  %1677 = vmatprep.mubr.bf16.mxu1 %v3449_v32 }
  0xb3   : > { %1549 = vmatmul.mubr.bf16.gmra.mxu0 %v3451_v34  ;;  %1678 = vmatmul.mubr.bf16.gmra.mxu1 %v3452_v35 }
  0xb4   : > { %1556 = vmatprep.mubr.bf16.mxu0 %v3456_v36  ;;  %1685 = vmatprep.mubr.bf16.mxu1 %v3458_v37 }
  0xbb   : > { %1557 = vmatmul.mubr.bf16.gmra.mxu0 %v3460_v38  ;;  %1686 = vmatmul.mubr.bf16.gmra.mxu1 %v3461_v39  ;;  %v3542_v38 = vld [vmem:[%s3841_s10 + $0x2e8] ss:$28 sps:$4 sm:$0xff]   ;;  %v3543_v39 = vld [vmem:[%s3841_s10 + $0x280] ss:$28 sps:$4 sm:$0xff]  }
  0xbc   : > { %1693 = vmatprep.mubr.bf16.mxu1 %v3462_v40  ;;  %1790 = vmatprep.mubr.bf16.mxu0 %v3466_v41  ;;  %v3544_v40 = vld [vmem:[%s3841_s10 + $0x324] ss:$28 sps:$4 sm:$0xff]   ;;  %v3546_v41 = vld [vmem:[%s3841_s10 + $0x2b8] ss:$28 sps:$4 sm:$0xff]  }
  0xc3   : > { %1694 = vmatmul.mubr.bf16.gmra.mxu1 %v3467_v43  ;;  %1791 = vmatmul.mubr.bf16.vlgmr.msra.gmra.mxu0 %v3464_v42 }
  0xc4   : > { %1701 = vmatprep.mubr.bf16.mxu1 %v3469_v44  ;;  %1798 = vmatprep.mubr.bf16.mxu0 %v3471_v45 }
  0xcb   : > { %1702 = vmatmul.mubr.bf16.gmra.mxu1 %v3473_v46  ;;  %1799 = vmatmul.mubr.bf16.gmra.mxu0 %v3474_v47 }
  0xcc   : > { %1709 = vmatprep.mubr.bf16.mxu1 %v3475_v48  ;;  %1806 = vmatprep.mubr.bf16.mxu0 %v3477_v49 }
  0xd3   : > { %1710 = vmatmul.mubr.bf16.gmra.mxu1 %v3479_v50  ;;  %1807 = vmatmul.mubr.bf16.gmra.mxu0 %v3480_v51 }
  0xd4   : > { %1717 = vmatprep.mubr.bf16.mxu1 %v3482_v52  ;;  %1814 = vmatprep.mubr.bf16.mxu0 %v3484_v53 }
  0xdb   : > { %1718 = vmatmul.mubr.bf16.gmra.mxu1 %v3486_v54  ;;  %1815 = vmatmul.mubr.bf16.gmra.mxu0 %v3487_v55  ;;  %v3547_v54 = vld [vmem:[%s3841_s10 + $0x320] ss:$28 sps:$4 sm:$0xff]   ;;  %v3548_v55 = vld [vmem:[%s3841_s10 + $0x2f0] ss:$28 sps:$4 sm:$0xff]  }
  0xdc   : > { %1725 = vmatprep.mubr.bf16.mxu1 %v3488_v56  ;;  %1822 = vmatprep.mubr.bf16.mxu0 %v3490_v57  ;;  %v3549_v56 = vld [vmem:[%s3841_s10 + $0x35c] ss:$28 sps:$4 sm:$0xff]   ;;  %v3551_v57 = vld [vmem:[%s3841_s10 + $0x328] ss:$28 sps:$4 sm:$0xff]  }
  0xe3   : > { %1726 = vmatmul.mubr.bf16.gmra.mxu1 %v3492_v58  ;;  %1823 = vmatmul.mubr.bf16.gmra.mxu0 %v3493_v59 }
  0xe4   : > { %1733 = vmatprep.mubr.bf16.mxu1 %v3495_v60  ;;  %1830 = vmatprep.mubr.bf16.mxu0 %v3497_v61 }
  0xeb   : > { %1734 = vmatmul.mubr.bf16.gmra.mxu1 %v3499_v62  ;;  %1831 = vmatmul.mubr.bf16.gmra.mxu0 %v3500_v63 }
  0xec   : > { %1741 = vmatprep.mubr.bf16.mxu1 %v3501_v0  ;;  %1838 = vmatprep.mubr.bf16.mxu0 %v3503_v1 }
  0xf3   : > { %1742 = vmatmul.mubr.bf16.gmra.mxu1 %v3505_v2  ;;  %1839 = vmatmul.mubr.bf16.gmra.mxu0 %v3506_v3 }
  0xf4   : > { %1749 = vmatprep.mubr.bf16.mxu1 %v3508_v4  ;;  %1846 = vmatprep.mubr.bf16.mxu0 %v3510_v5 }
  0xfb   : > { %1750 = vmatmul.mubr.bf16.gmra.mxu1 %v3512_v6  ;;  %1847 = vmatmul.mubr.bf16.gmra.mxu0 %v3513_v7  ;;  %v3552_v6 = vld [vmem:[%s3841_s10 + $0x358] ss:$28 sps:$4 sm:$0xff]   ;;  %v3553_v7 = vld [vmem:[%s3841_s10 + $0x360] ss:$28 sps:$4 sm:$0xff]   ;;  %s3614_s10 = scalar_lea.vmem %s3613_s24, 4096 }
  0xfc   : > { %1854 = vmatprep.mubr.bf16.mxu0 %v3514_v8  ;;  %3208 = vmatprep.mubr.bf16.mxu1 %v3516_v9  ;;  %p3616_p5 = scmp.lt.s32.totalorder %s3614_s10, %s3608_s7 }
  0xfe   : > { %p3617_p7 = por %p3616_p5, %p3615_p2 }
 0x100   : > { %p3618_p6 = pnand %p3617_p7, %p3611_p11 }
 0x103   : > { %1855 = vmatmul.mubr.bf16.gmra.mxu0 %v3517_v10  ;;  %3209 = vmatmul.mubr.bf16.vlgmr.msra.gmra.mxu1 %v3518_v11 }
 0x104   : > { %1862 = vmatprep.mubr.bf16.mxu0 %v3519_v12  ;;  %3212 = vmatprep.mubr.bf16.mxu1 %v3521_v13 }
 0x10b   : > { %1863 = vmatmul.mubr.bf16.gmra.mxu0 %v3522_v14  ;;  %3213 = vmatmul.mubr.bf16.gmra.mxu1 %v3523_v15 }
 0x10c   : > { %1870 = vmatprep.mubr.bf16.mxu0 %v3524_v16  ;;  %3216 = vmatprep.mubr.bf16.mxu1 %v3526_v17 }
 0x113   : > { %1871 = vmatmul.mubr.bf16.gmra.mxu0 %v3527_v18  ;;  %3217 = vmatmul.mubr.bf16.gmra.mxu1 %v3528_v19 }
 0x114   : > { %1878 = vmatprep.mubr.bf16.mxu0 %v3529_v20  ;;  %3220 = vmatprep.mubr.bf16.mxu1 %v3531_v21 }
 0x11b   : > { %1879 = vmatmul.mubr.bf16.gmra.mxu0 %v3532_v22  ;;  %3221 = vmatmul.mubr.bf16.gmra.mxu1 %v3533_v23 }
 0x11c   : > { %1886 = vmatprep.mubr.bf16.mxu0 %v3534_v24  ;;  %3224 = vmatprep.mubr.bf16.mxu1 %v3536_v25 }
 0x123   : > { %v2848_v30 = vpop.f32.mrf.mxu0  ;;  %v2920_v31 = vpop.f32.mrf.mxu1  ;;  %1887 = vmatmul.mubr.bf16.gmra.mxu0 %v3537_v26  ;;  %3225 = vmatmul.mubr.bf16.gmra.mxu1 %v3538_v27 }
 0x124   : > { %1894 = vmatprep.mubr.bf16.mxu0 %v3539_v28  ;;  %3228 = vmatprep.mubr.bf16.mxu1 %v3541_v29 }
 0x125   : > { %v2849_v32 = vpop.f32.mrf.mxu0  ;;  %v2921_v33 = vpop.f32.mrf.mxu1 }
 0x126   : > { %v3953_v34 = vadd.f32 %v2849_v32, %v2848_v30  ;;  %v3955_v35 = vadd.f32 %v2921_v33, %v2920_v31 }
 0x127   : > { %v2851_v36 = vpop.f32.mrf.mxu0  ;;  %v2923_v37 = vpop.f32.mrf.mxu1 }
 0x129   : > { %v2852_v42 = vpop.f32.mrf.mxu0  ;;  %v2924_v43 = vpop.f32.mrf.mxu1 }
 0x12a   : > { %v3961_v44 = vadd.f32 %v2852_v42, %v2851_v36  ;;  %v3963_v45 = vadd.f32 %v2924_v43, %v2923_v37 }
 0x12b   : > { %v2854_v46 = vpop.f32.mrf.mxu0  ;;  %v2926_v47 = vpop.f32.mrf.mxu1  ;;  %1895 = vmatmul.mubr.bf16.gmra.mxu0 %v3542_v38  ;;  %3229 = vmatmul.mubr.bf16.gmra.mxu1 %v3543_v39 }
 0x12c   : > { %1902 = vmatprep.mubr.bf16.mxu0 %v3544_v40  ;;  %3232 = vmatprep.mubr.bf16.mxu1 %v3546_v41 }
 0x12d   : > { %v2855_v48 = vpop.f32.mrf.mxu0  ;;  %v2927_v49 = vpop.f32.mrf.mxu1 }
 0x12e   : > { %v3965_v50 = vadd.f32 %v2855_v48, %v2854_v46  ;;  %v3967_v51 = vadd.f32 %v2927_v49, %v2926_v47 }
 0x12f   : > { %v2857_v52 = vpop.f32.mrf.mxu0  ;;  %v2929_v53 = vpop.f32.mrf.mxu1 }
 0x131   : > { %v2858_v58 = vpop.f32.mrf.mxu0  ;;  %v2930_v59 = vpop.f32.mrf.mxu1 }
 0x132   : > { %v3973_v60 = vadd.f32 %v2858_v58, %v2857_v52  ;;  %v3975_v61 = vadd.f32 %v2930_v59, %v2929_v53 }
 0x133   : > { %v2860_v62 = vpop.f32.mrf.mxu0  ;;  %v2932_v63 = vpop.f32.mrf.mxu1  ;;  %1903 = vmatmul.mubr.bf16.gmra.mxu0 %v3547_v54  ;;  %3233 = vmatmul.mubr.bf16.gmra.mxu1 %v3548_v55 }
 0x134   : > { %1910 = vmatprep.mubr.bf16.mxu0 %v3549_v56  ;;  %3236 = vmatprep.mubr.bf16.mxu1 %v3551_v57 }
 0x135   : > { %v2861_v0 = vpop.f32.mrf.mxu0  ;;  %v2933_v1 = vpop.f32.mrf.mxu1 }
 0x136   : > { %v2862_v2 = vadd.f32 %v2861_v0, %v2860_v62  ;;  %v3977_v3 = vadd.f32 %v2933_v1, %v2932_v63 }
 0x137   : > { %v2863_v4 = vpop.f32.mrf.mxu0  ;;  %v2935_v5 = vpop.f32.mrf.mxu1 }
 0x139   : > { %v2864_v8 = vpop.f32.mrf.mxu0  ;;  %v2936_v9 = vpop.f32.mrf.mxu1 }
 0x13a   : > { %v2865_v10 = vadd.f32 %v2864_v8, %v2863_v4  ;;  %v3981_v11 = vadd.f32 %v2936_v9, %v2935_v5 }
 0x13b   : > { %v2866_v12 = vpop.f32.mrf.mxu0  ;;  %v2938_v13 = vpop.f32.mrf.mxu1  ;;  %1911 = vmatmul.mubr.bf16.gmra.mxu0 %v3552_v6  ;;  %3237 = vmatmul.mubr.bf16.gmra.mxu1 %v3553_v7 }
 0x13d   : > { %v2867_v14 = vpop.f32.mrf.mxu0  ;;  %v2939_v15 = vpop.f32.mrf.mxu1 }
 0x13e   : > { %v2868_v16 = vadd.f32 %v2867_v14, %v2866_v12  ;;  %v3983_v17 = vadd.f32 %v2939_v15, %v2938_v13 }
 0x13f   : > { %v2869_v18 = vpop.f32.mrf.mxu0  ;;  %v2941_v19 = vpop.f32.mrf.mxu1 }
 0x141   : > { %v2870_v20 = vpop.f32.mrf.mxu0  ;;  %v2942_v21 = vpop.f32.mrf.mxu1 }
 0x142   : > { %v2871_v22 = vadd.f32 %v2870_v20, %v2869_v18  ;;  %v3985_v23 = vadd.f32 %v2942_v21, %v2941_v19 }
 0x143   : > { %v2872_v24 = vpop.f32.mrf.mxu0  ;;  %v2960_v25 = vpop.f32.mrf.mxu1 }
 0x145   : > { %v2873_v26 = vpop.f32.mrf.mxu0  ;;  %v2961_v27 = vpop.f32.mrf.mxu1 }
 0x146   : > { %v2874_v28 = vadd.f32 %v2873_v26, %v2872_v24  ;;  %v2962_v29 = vadd.f32 %v2961_v27, %v2960_v25 }
 0x147   : > { %v2875_v30 = vpop.f32.mrf.mxu0  ;;  %v2963_v31 = vpop.f32.mrf.mxu1 }
 0x148   : > { %v3988_v32 = vadd.f32 %v2962_v29, %v3953_v34 }
 0x149   : > { %v2876_v33 = vpop.f32.mrf.mxu0  ;;  %v2964_v36 = vpop.f32.mrf.mxu1 }
 0x14a   : > { %v2877_v37 = vadd.f32 %v2876_v33, %v2875_v30  ;;  %v2965_v38 = vadd.f32 %v2964_v36, %v2963_v31 }
 0x14b   : > { %v2878_v39 = vpop.f32.mrf.mxu0  ;;  %v2966_v40 = vpop.f32.mrf.mxu1 }
 0x14c   : > { %v3991_v41 = vadd.f32 %v2965_v38, %v3961_v44 }
 0x14d   : > { %v2879_v42 = vpop.f32.mrf.mxu0  ;;  %v2967_v43 = vpop.f32.mrf.mxu1 }
 0x14e   : > { %v2880_v46 = vadd.f32 %v2879_v42, %v2878_v39  ;;  %v2968_v47 = vadd.f32 %v2967_v43, %v2966_v40 }
 0x14f   : > { %v2881_v48 = vpop.f32.mrf.mxu0  ;;  %v2969_v49 = vpop.f32.mrf.mxu1 }
 0x150   : > { %v3994_v52 = vadd.f32 %v2968_v47, %v3965_v50 }
 0x151   : > { %v2882_v34 = vpop.f32.mrf.mxu0  ;;  %v2970_v53 = vpop.f32.mrf.mxu1 }
 0x152   : > { %v2883_v54 = vadd.f32 %v2882_v34, %v2881_v48  ;;  %v2971_v55 = vadd.f32 %v2970_v53, %v2969_v49 }
 0x153   : > { %v2884_v56 = vpop.f32.mrf.mxu0  ;;  %v2972_v57 = vpop.f32.mrf.mxu1 }
 0x154   : > { %v3997_v58 = vadd.f32 %v2971_v55, %v3973_v60 }
 0x155   : > { %v2885_v44 = vpop.f32.mrf.mxu0  ;;  %v2973_v59 = vpop.f32.mrf.mxu1 }
 0x156   : > { %v2886_v62 = vadd.f32 %v2885_v44, %v2884_v56  ;;  %v2974_v63 = vadd.f32 %v2973_v59, %v2972_v57 }
 0x157   : > { %v2887_v0 = vpop.f32.mrf.mxu0  ;;  %v2975_v1 = vpop.f32.mrf.mxu1 }
 0x158   : > { %v3999_v4 = vadd.f32 %v2974_v63, %v2862_v2 }
 0x159   : > { %v2888_v5 = vpop.f32.mrf.mxu0  ;;  %v2976_v50 = vpop.f32.mrf.mxu1 }
 0x15a   : > { %v2889_v6 = vadd.f32 %v2888_v5, %v2887_v0  ;;  %v2977_v7 = vadd.f32 %v2976_v50, %v2975_v1 }
 0x15b   : > { %v2890_v8 = vpop.f32.mrf.mxu0  ;;  %v2978_v9 = vpop.f32.mrf.mxu1 }
 0x15c   : > { %v4001_v12 = vadd.f32 %v2977_v7, %v2865_v10 }
 0x15d   : > { %v2891_v13 = vpop.f32.mrf.mxu0  ;;  %v2979_v14 = vpop.f32.mrf.mxu1 }
 0x15e   : > { %v2892_v60 = vadd.f32 %v2891_v13, %v2890_v8  ;;  %v2980_v15 = vadd.f32 %v2979_v14, %v2978_v9 }
 0x15f   : > { %v2893_v18 = vpop.f32.mrf.mxu0  ;;  %v2981_v19 = vpop.f32.mrf.mxu1 }
 0x160   : > { %v4003_v20 = vadd.f32 %v2980_v15, %v2868_v16 }
 0x161   : > { %v2894_v21 = vpop.f32.mrf.mxu0  ;;  %v2982_v24 = vpop.f32.mrf.mxu1 }
 0x162   : > { %v2895_v2 = vadd.f32 %v2894_v21, %v2893_v18  ;;  %v2983_v25 = vadd.f32 %v2982_v24, %v2981_v19 }
 0x163   : > { %v2896_v26 = vpop.f32.mrf.mxu0  ;;  %v2984_v27 = vpop.f32.mrf.mxu1 }
 0x164   : > { %v4005_v29 = vadd.f32 %v2983_v25, %v2871_v22 }
 0x165   : > { %v2897_v30 = vpop.f32.mrf.mxu0  ;;  %v2985_v31 = vpop.f32.mrf.mxu1 }
 0x166   : > { %v2898_v10 = vadd.f32 %v2897_v30, %v2896_v26  ;;  %v2986_v33 = vadd.f32 %v2985_v31, %v2984_v27 }
 0x167   : > { %v2899_v36 = vpop.f32.mrf.mxu0  ;;  %v2987_v38 = vpop.f32.mrf.mxu1 }
 0x168   : > { %v4007_v39 = vadd.f32 %v2986_v33, %v2874_v28 }
 0x169   : > { %v2900_v40 = vpop.f32.mrf.mxu0  ;;  %v2988_v42 = vpop.f32.mrf.mxu1 }
 0x16a   : > { %v2901_v16 = vadd.f32 %v2900_v40, %v2899_v36  ;;  %v2989_v43 = vadd.f32 %v2988_v42, %v2987_v38 }
 0x16b   : > { %v2902_v47 = vpop.f32.mrf.mxu0  ;;  %v2990_v48 = vpop.f32.mrf.mxu1 }
 0x16c   : > { %v4009_v49 = vadd.f32 %v2989_v43, %v2877_v37 }
 0x16d   : > { %v2903_v34 = vpop.f32.mrf.mxu0  ;;  %v2991_v53 = vpop.f32.mrf.mxu1 }
 0x16e   : > { %v2904_v22 = vadd.f32 %v2903_v34, %v2902_v47  ;;  %v2992_v55 = vadd.f32 %v2991_v53, %v2990_v48 }
 0x16f   : > { %v2905_v56 = vpop.f32.mrf.mxu0  ;;  %v2993_v57 = vpop.f32.mrf.mxu1 }
 0x170   : > { %v4011_v44 = vadd.f32 %v2992_v55, %v2880_v46 }
 0x171   : > { %v2906_v59 = vpop.f32.mrf.mxu0  ;;  %v2994_v63 = vpop.f32.mrf.mxu1 }
 0x172   : > { %v2907_v28 = vadd.f32 %v2906_v59, %v2905_v56  ;;  %v2995_v0 = vadd.f32 %v2994_v63, %v2993_v57 }
 0x173   : > { %v2908_v1 = vpop.f32.mrf.mxu0  ;;  %v2996_v5 = vpop.f32.mrf.mxu1 }
 0x174   : > { %v4013_v50 = vadd.f32 %v2995_v0, %v2883_v54 }
 0x175   : > { %v2909_v7 = vpop.f32.mrf.mxu0  ;;  %v2997_v8 = vpop.f32.mrf.mxu1 }
 0x176   : > { %v2910_v37 = vadd.f32 %v2909_v7, %v2908_v1  ;;  %v2998_v9 = vadd.f32 %v2997_v8, %v2996_v5 }
 0x177   : > { %v2911_v13 = vpop.f32.mrf.mxu0  ;;  %v2999_v14 = vpop.f32.mrf.mxu1 }
 0x178   : > { %v4015_v15 = vadd.f32 %v2998_v9, %v2886_v62 }
 0x179   : > { %v2912_v18 = vpop.f32.mrf.mxu0  ;;  %v3000_v19 = vpop.f32.mrf.mxu1 }
 0x17a   : > { %v2913_v46 = vadd.f32 %v2912_v18, %v2911_v13  ;;  %v3001_v21 = vadd.f32 %v3000_v19, %v2999_v14 }
 0x17b   : > { %v2914_v24 = vpop.f32.mrf.mxu0  ;;  %v3002_v25 = vpop.f32.mrf.mxu1 }
 0x17c   : > { %v4017_v26 = vadd.f32 %v3001_v21, %v2889_v6 }
 0x17d   : > { %v2915_v27 = vpop.f32.mrf.mxu0  ;;  %v3003_v30 = vpop.f32.mrf.mxu1 }
 0x17e   : > { %v2916_v54 = vadd.f32 %v2915_v27, %v2914_v24  ;;  %v3004_v31 = vadd.f32 %v3003_v30, %v3002_v25 }
 0x17f   : > { %v2917_v33 = vpop.f32.mrf.mxu0  ;;  %v3005_v36 = vpop.f32.mrf.mxu1 }
 0x180   : > { %v4019_v38 = vadd.f32 %v3004_v31, %v2892_v60 }
 0x181   : > { %v2918_v40 = vpop.f32.mrf.mxu0  ;;  %v3006_v42 = vpop.f32.mrf.mxu1 }
 0x182   : > { %v2919_v62 = vadd.f32 %v2918_v40, %v2917_v33  ;;  %v3007_v43 = vadd.f32 %v3006_v42, %v3005_v36 }
 0x183   : > { %v3008_v47 = vpop.f32.mrf.mxu1  ;;  %v3072_v48 = vpop.f32.mrf.mxu0 }
 0x184   : > { %v4021_v34 = vadd.f32 %v3007_v43, %v2895_v2 }
 0x185   : > { %v3009_v53 = vpop.f32.mrf.mxu1  ;;  %v3073_v55 = vpop.f32.mrf.mxu0 }
 0x186   : > { %v3010_v6 = vadd.f32 %v3009_v53, %v3008_v47  ;;  %v3074_v56 = vadd.f32 %v3073_v55, %v3072_v48 }
 0x187   : > { %v3011_v57 = vpop.f32.mrf.mxu1  ;;  %v4023_v59 = vpop.f32.mrf.mxu0 }
 0x188   : > { %v4025_v63 = vadd.f32 %v3010_v6, %v2898_v10  ;;  %v4028_v60 = vadd.f32 %v3074_v56, %v3988_v32 }
 0x189   : > { %v3012_v0 = vpop.f32.mrf.mxu1  ;;  %v4030_v1 = vpop.f32.mrf.mxu0 }
 0x18a   : > { %v3013_v5 = vadd.f32 %v3012_v0, %v3011_v57 }
 0x18b   : > { %v3014_v7 = vpop.f32.mrf.mxu1  ;;  %v4032_v8 = vpop.f32.mrf.mxu0 }
 0x18c   : > { %v4034_v2 = vadd.f32 %v3013_v5, %v2901_v16 }
 0x18d   : > { %v3015_v9 = vpop.f32.mrf.mxu1  ;;  %v4036_v13 = vpop.f32.mrf.mxu0 }
 0x18e   : > { %v3016_v14 = vadd.f32 %v3015_v9, %v3014_v7 }
 0x18f   : > { %v3017_v18 = vpop.f32.mrf.mxu1  ;;  %v4038_v19 = vpop.f32.mrf.mxu0 }
 0x190   : > { %v4040_v10 = vadd.f32 %v3016_v14, %v2904_v22 }
 0x191   : > { %v3018_v32 = vpop.f32.mrf.mxu1  ;;  %v4042_v21 = vpop.f32.mrf.mxu0 }
 0x192   : > { %v3019_v24 = vadd.f32 %v3018_v32, %v3017_v18 }
 0x193   : > { %v3020_v25 = vpop.f32.mrf.mxu1  ;;  %v4044_v27 = vpop.f32.mrf.mxu0 }
 0x194   : > { %v4046_v30 = vadd.f32 %v3019_v24, %v2907_v28 }
 0x195   : > { %v3021_v16 = vpop.f32.mrf.mxu1  ;;  %v4048_v31 = vpop.f32.mrf.mxu0 }
 0x196   : > { %v3022_v33 = vadd.f32 %v3021_v16, %v3020_v25 }
 0x197   : > { %v3023_v36 = vpop.f32.mrf.mxu1  ;;  %v4050_v40 = vpop.f32.mrf.mxu0 }
 0x198   : > { %v4052_v42 = vadd.f32 %v3022_v33, %v2910_v37 }
 0x199   : > { %v3024_v22 = vpop.f32.mrf.mxu1  ;;  %v4054_v43 = vpop.f32.mrf.mxu0 }
 0x19a   : > { %4387 = vst [vmem:[#allocation11_spill] sm:$0xff] %v4052_v42  ;;  %v3025_v47 = vadd.f32 %v3024_v22, %v3023_v36 }
 0x19b   : > { %v3026_v48 = vpop.f32.mrf.mxu1  ;;  %v4056_v53 = vpop.f32.mrf.mxu0 }
 0x19c   : > { %v4058_v55 = vadd.f32 %v3025_v47, %v2913_v46 }
 0x19d   : > { %v3027_v28 = vpop.f32.mrf.mxu1  ;;  %v4060_v6 = vpop.f32.mrf.mxu0 }
 0x19e   : > { %4388 = vst [vmem:[#allocation12_spill] sm:$0xff] %v4058_v55  ;;  %v3028_v56 = vadd.f32 %v3027_v28, %v3026_v48 }
 0x19f   : > { %v3029_v57 = vpop.f32.mrf.mxu1  ;;  %v4062_v0 = vpop.f32.mrf.mxu0 }
 0x1a0   : > { %v4064_v5 = vadd.f32 %v3028_v56, %v2916_v54 }
 0x1a1   : > { %v3030_v37 = vpop.f32.mrf.mxu1  ;;  %v4066_v7 = vpop.f32.mrf.mxu0 }
 0x1a2   : > { %4389 = vst [vmem:[#allocation13_spill] sm:$0xff] %v4064_v5  ;;  %v3031_v9 = vadd.f32 %v3030_v37, %v3029_v57 }
 0x1a3   : > { %v3032_v14 = vpop.f32.mrf.mxu1  ;;  %v4068_v18 = vpop.f32.mrf.mxu0 }
 0x1a4   : > { %v4070_v32 = vadd.f32 %v3031_v9, %v2919_v62 }
 0x1a5   : > { %v3033_v46 = vpop.f32.mrf.mxu1  ;;  %v4072_v24 = vpop.f32.mrf.mxu0 }
 0x1a6   : > { %4390 = vst [vmem:[#allocation14_spill] sm:$0xff] %v4070_v32  ;;  %v3034_v25 = vadd.f32 %v3033_v46, %v3032_v14 }
 0x1a7   : > { %v3035_v16 = vpop.f32.mrf.mxu1  ;;  %v4074_v33 = vpop.f32.mrf.mxu0 }
 0x1a8   : > { %v4077_v36 = vadd.f32 %v3034_v25, %v3955_v35 }
 0x1a9   : > { %v3036_v54 = vpop.f32.mrf.mxu1  ;;  %v4079_v22 = vpop.f32.mrf.mxu0 }
 0x1aa   : > { %4391 = vst [vmem:[#allocation15_spill] sm:$0xff] %v4077_v36  ;;  %v3037_v47 = vadd.f32 %v3036_v54, %v3035_v16 }
 0x1ab   : > { %v3038_v48 = vpop.f32.mrf.mxu1  ;;  %v4081_v28 = vpop.f32.mrf.mxu0 }
 0x1ac   : > { %v4084_v62 = vadd.f32 %v3037_v47, %v3963_v45 }
 0x1ad   : > { %v3039_v56 = vpop.f32.mrf.mxu1  ;;  %v4086_v57 = vpop.f32.mrf.mxu0 }
 0x1ae   : > { %4392 = vst [vmem:[#allocation16_spill] sm:$0xff] %v4084_v62  ;;  %v3040_v37 = vadd.f32 %v3039_v56, %v3038_v48 }
 0x1af   : > { %v3041_v9 = vpop.f32.mrf.mxu1  ;;  %v4088_v14 = vpop.f32.mrf.mxu0 }
 0x1b0   : > { %v4091_v35 = vadd.f32 %v3040_v37, %v3967_v51 }
 0x1b1   : > { %v3042_v46 = vpop.f32.mrf.mxu1  ;;  %v4093_v25 = vpop.f32.mrf.mxu0 }
 0x1b2   : > { %4393 = vst [vmem:[#allocation17_spill] sm:$0xff] %v4091_v35  ;;  %v3043_v16 = vadd.f32 %v3042_v46, %v3041_v9 }
 0x1b3   : > { %v3044_v54 = vpop.f32.mrf.mxu1  ;;  %v4095_v36 = vpop.f32.mrf.mxu0 }
 0x1b4   : > { %v4098_v45 = vadd.f32 %v3043_v16, %v3975_v61 }
 0x1b5   : > { %v3045_v47 = vpop.f32.mrf.mxu1  ;;  %v4100_v62 = vpop.f32.mrf.mxu0 }
 0x1b6   : > { %4394 = vst [vmem:[#allocation18_spill] sm:$0xff] %v4098_v45  ;;  %v3046_v48 = vadd.f32 %v3045_v47, %v3044_v54  ;;  %v3080_v54 = vadd.f32 %v4036_v13, %v4032_v8  ;;  %v4133_v8 = vld [vmem:[%s4374_s2] ss:$0 sm:$0xff] }
 0x1b7   : > { %v3047_v56 = vpop.f32.mrf.mxu1  ;;  %v4102_v55 = vpop.f32.mrf.mxu0 }
 0x1b8   : > { %v4105_v51 = vadd.f32 %v3046_v48, %v3977_v3 }
 0x1b9   : > { %v3048_v37 = vpop.f32.mrf.mxu1  ;;  %v4107_v35 = vpop.f32.mrf.mxu0 }
 0x1ba   : > { %4395 = vst [vmem:[#allocation19_spill] sm:$0xff] %v4105_v51  ;;  %v3049_v9 = vadd.f32 %v3048_v37, %v3047_v56 }
 0x1bb   : > { %v3050_v46 = vpop.f32.mrf.mxu1  ;;  %v4109_v32 = vpop.f32.mrf.mxu0 }
 0x1bc   : > { %v4112_v61 = vadd.f32 %v3049_v9, %v3981_v11  ;;  %v3083_v11 = vadd.f32 %v4042_v21, %v4038_v19 }
 0x1bd   : > { %v3051_v16 = vpop.f32.mrf.mxu1  ;;  %v4114_v45 = vpop.f32.mrf.mxu0 }
 0x1be   : > { %4396 = vst [vmem:[#allocation20_spill] sm:$0xff] %v4112_v61  ;;  %v3052_v47 = vadd.f32 %v3051_v16, %v3050_v46  ;;  %v1801_v61 = vadd.f32 %v3080_v54, %v3994_v52  ;;  %v3077_v46 = vadd.f32 %v4030_v1, %v4023_v59  ;;  %v3092_v52 = vadd.f32 %v4060_v6, %v4056_v53 }
 0x1bf   : > { %v3053_v42 = vpop.f32.mrf.mxu1  ;;  %v4118_v3 = vpop.f32.mrf.mxu0  ;;  %v1804_v54 = vadd.f32 %v3083_v11, %v3997_v58  ;;  %v3086_v1 = vadd.f32 %v4048_v31, %v4044_v27  ;;  %v3095_v53 = vadd.f32 %v4066_v7, %v4062_v0  ;;  %v3089_v31 = vadd.f32 %v4054_v43, %v4050_v40 }
 0x1c0   : > { %v4121_v48 = vadd.f32 %v3052_v47, %v3983_v17  ;;  %v1796_v58 = vadd.f32 %v3077_v46, %v3991_v41  ;;  %v3104_v46 = vadd.f32 %v4086_v57, %v4081_v28  ;;  %v3098_v28 = vadd.f32 %v4072_v24, %v4068_v18 }
 0x1c1   : > { %v3054_v56 = vpop.f32.mrf.mxu1  ;;  %v4123_v37 = vpop.f32.mrf.mxu0  ;;  %v1809_v41 = vadd.f32 %v3086_v1, %v3999_v4 }
 0x1c2   : > { %v3055_v9 = vadd.f32 %v3054_v56, %v3053_v42 }
 0x1c3   : > { %v4128_v51 = vpop.f32.mrf.mxu0  ;;  %v3210_v5 = vpop.f32.mrf.mxu1 }
 0x1c4   : > { %v4136_v17 = vadd.f32 %v3055_v9, %v3985_v23  ;;  %v1962_v13 = vadd.f32 %v3210_v5, %v1801_v61  ;;  %v4150_v23 = vld [vmem:[%s4375_s3] ss:$0 sm:$0xff]  ;;  %v1817_v9 = vadd.f32 %v3092_v52, %v4003_v20 }
 0x1c5   : > { %v4140_v16 = vpop.f32.mrf.mxu0  ;;  %v1953_v19 = vpop.f32.mrf.mxu1 }
 0x1c6   : > { %v2089_v21 = vmul.f32 %v4133_v8, %v1962_v13  ;;  %v1954_v42 = vadd.f32 %v1953_v19, %v4028_v60 }
 0x1c7   : > { %v4152_v5 = vpop.f32.mrf.mxu0  ;;  %v3211_v59 = vpop.f32.mrf.mxu1 }
 0x1c8   : > { %v1965_v61 = vadd.f32 %v3211_v59, %v1804_v54  ;;  %v2087_v60 = vmul.f32 %v4133_v8, %v1954_v42  ;;  %v2128_v56 = vadd.f32 %v4150_v23, %v2089_v21  ;;  %v1820_v54 = vadd.f32 %v3095_v53, %v4005_v29 }
 0x1c9   : > { %v4159_v6 = vpop.f32.mrf.mxu0  ;;  %v1956_v47 = vpop.f32.mrf.mxu1  ;;  %v3107_v29 = vadd.f32 %v4093_v25, %v4088_v14 }
 0x1ca   : > { %v2090_v11 = vmul.f32 %v4133_v8, %v1965_v61  ;;  %v1957_v13 = vadd.f32 %v1956_v47, %v1796_v58  ;;  %v2126_v21 = vadd.f32 %v4150_v23, %v2087_v60  ;;  %v2160_v59 = vmax.f32 %v2128_v56, 0.0 }
 0x1cb   : > { %v4165_v19 = vpop.f32.mrf.mxu0  ;;  %v3214_v27 = vpop.f32.mrf.mxu1  ;;  %v1812_v47 = vadd.f32 %v3089_v31, %v4001_v12  ;;  %v1833_v12 = vadd.f32 %v3104_v46, %v4011_v44 }
 0x1cc   : > { %v2129_v0 = vadd.f32 %v4150_v23, %v2090_v11  ;;  %v1978_v7 = vadd.f32 %v3214_v27, %v1817_v9  ;;  %v2088_v20 = vmul.f32 %v4133_v8, %v1957_v13  ;;  %v2158_v53 = vmax.f32 %v2126_v21, 0.0 }
 0x1cd   : > { %v4176_v52 = vpop.f32.mrf.mxu0  ;;  %v1969_v42 = vpop.f32.mrf.mxu1  ;;  %v1825_v21 = vadd.f32 %v3098_v28, %v4007_v39 }
 0x1ce   : > { %v2161_v40 = vmax.f32 %v2129_v0, 0.0  ;;  %v2093_v43 = vmul.f32 %v4133_v8, %v1978_v7  ;;  %v1970_v61 = vadd.f32 %v1969_v42, %v1809_v41  ;;  %v2127_v58 = vadd.f32 %v4150_v23, %v2088_v20 }
 0x1cf   : > { %v4181_v4 = vpop.f32.mrf.mxu0  ;;  %v3215_v1 = vpop.f32.mrf.mxu1  ;;  %v3101_v0 = vadd.f32 %v4079_v22, %v4074_v33  ;;  %v3116_v20 = vadd.f32 %v4114_v45, %v4109_v32  ;;  %v3110_v45 = vadd.f32 %v4100_v62, %v4095_v36 }
 0x1d0   : > { %v2745_v57 = vpack.c.bf16 %v2161_v40, %v2160_v59  ;;  %v1981_v60 = vadd.f32 %v3215_v1, %v1820_v54  ;;  %v2159_v56 = vmax.f32 %v2127_v58, 0.0  ;;  %v2091_v11 = vmul.f32 %v4133_v8, %v1970_v61 }
 0x1d1   : > { %v4189_v9 = vpop.f32.mrf.mxu0  ;;  %v1972_v13 = vpop.f32.mrf.mxu1  ;;  %v2132_v18 = vadd.f32 %v4150_v23, %v2093_v43  ;;  %v1836_v59 = vadd.f32 %v3107_v29, %v4013_v50  ;;  %v1828_v28 = vadd.f32 %v3101_v0, %v4009_v49  ;;  %v3119_v50 = vadd.f32 %v4123_v37, %v4118_v3 }
 0x1d2   : > { %2817 = vst [vmem:[%s4191_s8 + $0x8] sm:$0xff] %v2745_v57   ;;  %v2094_v24 = vmul.f32 %v4133_v8, %v1981_v60  ;;  %v2740_v27 = vpack.c.bf16 %v2159_v56, %v2158_v53  ;;  %v1973_v14 = vadd.f32 %v1972_v13, %v1812_v47  ;;  %v2130_v42 = vadd.f32 %v4150_v23, %v2091_v11 }
 0x1d3   : > { %v4197_v25 = vpop.f32.mrf.mxu0  ;;  %v3218_v31 = vpop.f32.mrf.mxu1  ;;  %v2164_v40 = vmax.f32 %v2132_v18, 0.0  ;;  %v1849_v62 = vadd.f32 %v3116_v20, %v4019_v38  ;;  %v3113_v3 = vadd.f32 %v4107_v35, %v4102_v55 }
 0x1d4   : > { %v2133_v7 = vadd.f32 %v4150_v23, %v2094_v24  ;;  %v1994_v41 = vadd.f32 %v3218_v31, %v1833_v12  ;;  %2741 = vst [vmem:[%s4191_s8] sm:$0xff] %v2740_v27   ;;  %v2092_v44 = vmul.f32 %v4133_v8, %v1973_v14  ;;  %v2162_v57 = vmax.f32 %v2130_v42, 0.0 }
 0x1d5   : > { %v4208_v46 = vpop.f32.mrf.mxu0  ;;  %v1985_v54 = vpop.f32.mrf.mxu1  ;;  %v1841_v12 = vadd.f32 %v3110_v45, %v4015_v15  ;;  %v3128_v27 = vadd.f32 %v4176_v52, %v4165_v19  ;;  %v3122_v19 = vadd.f32 %v4140_v16, %v4128_v51 }
 0x1d6   : > { %v2165_v33 = vmax.f32 %v2133_v7, 0.0  ;;  %v2097_v22 = vmul.f32 %v4133_v8, %v1994_v41  ;;  %v1986_v43 = vadd.f32 %v1985_v54, %v1825_v21  ;;  %v2131_v39 = vadd.f32 %v4150_v23, %v2092_v44 }
 0x1d7   : > { %v4213_v61 = vpop.f32.mrf.mxu0  ;;  %v3219_v32 = vpop.f32.mrf.mxu1  ;;  %v1852_v7 = vadd.f32 %v3119_v50, %v4021_v34  ;;  %v1844_v54 = vadd.f32 %v3113_v3, %v4017_v26  ;;  %v3131_v34 = vadd.f32 %v4189_v9, %v4181_v4  ;;  %v1865_v51 = vadd.f32 %v3128_v27, %v4040_v10 }
 0x1d8   : > { %v2755_v58 = vpack.c.bf16 %v2165_v33, %v2164_v40  ;;  %v1997_v1 = vadd.f32 %v3219_v32, %v1836_v59  ;;  %v2163_v60 = vmax.f32 %v2131_v39, 0.0  ;;  %v2095_v47 = vmul.f32 %v4133_v8, %v1986_v43 }
 0x1d9   : > { %v4221_v29 = vpop.f32.mrf.mxu0  ;;  %v1988_v53 = vpop.f32.mrf.mxu1  ;;  %v2136_v56 = vadd.f32 %v4150_v23, %v2097_v22  ;;  %v3125_v26 = vadd.f32 %v4159_v6, %v4152_v5 }
 0x1da   : > { %2819 = vst [vmem:[%s4191_s8 + $0x18] sm:$0xff] %v2755_v58   ;;  %v2098_v36 = vmul.f32 %v4133_v8, %v1997_v1  ;;  %v2750_v11 = vpack.c.bf16 %v2163_v60, %v2162_v57  ;;  %v1989_v49 = vadd.f32 %v1988_v53, %v1828_v28  ;;  %v2134_v14 = vadd.f32 %v4150_v23, %v2095_v47 }
 0x1db   : > { %v3138_v13 = vpop.f32.mrf.mxu0  ;;  %v3222_v18 = vpop.f32.mrf.mxu1  ;;  %v2168_v41 = vmax.f32 %v2136_v56, 0.0  ;;  %v1857_v28 = vadd.f32 %v3122_v19, %v4025_v63  ;;  %v1868_v53 = vadd.f32 %v3131_v34, %v4046_v30  ;;  %v4399_v34 = vld [vmem:[#allocation14_spill] sm:$0xff] }
 0x1dc   : > { %v2137_v37 = vadd.f32 %v4150_v23, %v2098_v36  ;;  %v2010_v24 = vadd.f32 %v3222_v18, %v1849_v62  ;;  %2818 = vst [vmem:[%s4191_s8 + $0x10] sm:$0xff] %v2750_v11   ;;  %v2096_v38 = vmul.f32 %v4133_v8, %v1989_v49  ;;  %v2166_v59 = vmax.f32 %v2134_v14, 0.0 }
 0x1dd   : > { %v3139_v31 = vpop.f32.mrf.mxu0  ;;  %v2001_v0 = vpop.f32.mrf.mxu1  ;;  %v1860_v49 = vadd.f32 %v3125_v26, %v4034_v2 }
 0x1de   : > { %v2169_v21 = vmax.f32 %v2137_v37, 0.0  ;;  %v2101_v55 = vmul.f32 %v4133_v8, %v2010_v24  ;;  %v2002_v35 = vadd.f32 %v2001_v0, %v1841_v12  ;;  %v2135_v15 = vadd.f32 %v4150_v23, %v2096_v38  ;;  %v4397_v0 = vld [vmem:[#allocation13_spill] sm:$0xff] }
 0x1df   : > { %v3141_v20 = vpop.f32.mrf.mxu0  ;;  %v3223_v42 = vpop.f32.mrf.mxu1  ;;  %v3140_v50 = vadd.f32 %v3139_v31, %v3138_v13  ;;  %v3134_v13 = vadd.f32 %v4208_v46, %v4197_v25 }
 0x1e0   : > { %v2765_v52 = vpack.c.bf16 %v2169_v21, %v2168_v41  ;;  %v2013_v44 = vadd.f32 %v3223_v42, %v1852_v7  ;;  %v2167_v40 = vmax.f32 %v2135_v15, 0.0  ;;  %v2099_v33 = vmul.f32 %v4133_v8, %v2002_v35  ;;  %v4398_v15 = vld [vmem:[#allocation11_spill] sm:$0xff] }
 0x1e1   : > { %v3142_v22 = vpop.f32.mrf.mxu0  ;;  %v2004_v43 = vpop.f32.mrf.mxu1  ;;  %v2140_v39 = vadd.f32 %v4150_v23, %v2101_v55  ;;  %v1881_v2 = vadd.f32 %v3140_v50, %v4397_v0  ;;  %v3137_v21 = vadd.f32 %v4221_v29, %v4213_v61 }
 0x1e2   : > { %2821 = vst [vmem:[%s4191_s8 + $0x28] sm:$0xff] %v2765_v52   ;;  %v2102_v32 = vmul.f32 %v4133_v8, %v2013_v44  ;;  %v2760_v16 = vpack.c.bf16 %v2167_v40, %v2166_v59  ;;  %v2005_v45 = vadd.f32 %v2004_v43, %v1844_v54  ;;  %v2138_v57 = vadd.f32 %v4150_v23, %v2099_v33 }
 0x1e3   : > { %v3144_v4 = vpop.f32.mrf.mxu0  ;;  %v3226_v9 = vpop.f32.mrf.mxu1  ;;  %v2172_v5 = vmax.f32 %v2140_v39, 0.0  ;;  %v3143_v3 = vadd.f32 %v3142_v22, %v3141_v20  ;;  %v1873_v20 = vadd.f32 %v3134_v13, %v4398_v15  ;;  %v4404_v15 = vld [vmem:[#allocation16_spill] sm:$0xff] }
 0x1e4   : > { %v2141_v58 = vadd.f32 %v4150_v23, %v2102_v32  ;;  %v2026_v1 = vadd.f32 %v3226_v9, %v1865_v51  ;;  %2820 = vst [vmem:[%s4191_s8 + $0x20] sm:$0xff] %v2760_v16   ;;  %v2100_v60 = vmul.f32 %v4133_v8, %v2005_v45  ;;  %v2170_v24 = vmax.f32 %v2138_v57, 0.0  ;;  %v4400_v16 = vld [vmem:[#allocation12_spill] sm:$0xff] }
 0x1e5   : > { %v3145_v47 = vpop.f32.mrf.mxu0  ;;  %v2017_v10 = vpop.f32.mrf.mxu1  ;;  %v1884_v59 = vadd.f32 %v3143_v3, %v4399_v34  ;;  %v1876_v45 = vadd.f32 %v3137_v21, %v4400_v16 }
 0x1e6   : > { %v2173_v6 = vmax.f32 %v2141_v58, 0.0  ;;  %v2105_v56 = vmul.f32 %v4133_v8, %v2026_v1  ;;  %v2018_v36 = vadd.f32 %v2017_v10, %v1857_v28  ;;  %v2139_v62 = vadd.f32 %v4150_v23, %v2100_v60 }
 0x1e7   : > { %v3147_v11 = vpop.f32.mrf.mxu0  ;;  %v3227_v63 = vpop.f32.mrf.mxu1  ;;  %v3146_v32 = vadd.f32 %v3145_v47, %v3144_v4 }
 0x1e8   : > { %v2775_v18 = vpack.c.bf16 %v2173_v6, %v2172_v5  ;;  %v2029_v37 = vadd.f32 %v3227_v63, %v1868_v53  ;;  %v2171_v30 = vmax.f32 %v2139_v62, 0.0  ;;  %v2144_v12 = vadd.f32 %v4150_v23, %v2105_v56  ;;  %v4401_v53 = vld [vmem:[#allocation17_spill] sm:$0xff]  ;;  %v4402_v63 = vld [vmem:[#allocation15_spill] sm:$0xff] }
 0x1e9   : > { %v2103_v27 = vmul.f32 %v4133_v8, %v2018_v36  ;;  %v3148_v14 = vpop.f32.mrf.mxu0  ;;  %v2020_v38 = vpop.f32.mrf.mxu1 }
 0x1ea   : > { %2823 = vst [vmem:[%s4191_s8 + $0x38] sm:$0xff] %v2775_v18   ;;  %v2106_v31 = vmul.f32 %v4133_v8, %v2029_v37  ;;  %v2770_v7 = vpack.c.bf16 %v2171_v30, %v2170_v24  ;;  %v2021_v41 = vadd.f32 %v2020_v38, %v1860_v49  ;;  %v2176_v42 = vmax.f32 %v2144_v12, 0.0 }
 0x1eb   : > { %v3150_v25 = vpop.f32.mrf.mxu0  ;;  %v3230_v46 = vpop.f32.mrf.mxu1  ;;  %v2142_v19 = vadd.f32 %v4150_v23, %v2103_v27  ;;  %v1889_v49 = vadd.f32 %v3146_v32, %v4402_v63  ;;  %v3149_v13 = vadd.f32 %v3148_v14, %v3147_v11 }
 0x1ec   : > { %v2145_v55 = vadd.f32 %v4150_v23, %v2106_v31  ;;  %v2042_v35 = vadd.f32 %v3230_v46, %v1881_v2  ;;  %2822 = vst [vmem:[%s4191_s8 + $0x30] sm:$0xff] %v2770_v7   ;;  %v2104_v52 = vmul.f32 %v4133_v8, %v2021_v41  ;;  %v4403_v31 = vld [vmem:[#allocation18_spill] sm:$0xff] }
 0x1ed   : > { %v3151_v44 = vpop.f32.mrf.mxu0  ;;  %v2033_v54 = vpop.f32.mrf.mxu1  ;;  %v2174_v9 = vmax.f32 %v2142_v19, 0.0 }
 0x1ee   : > { %v2177_v40 = vmax.f32 %v2145_v55, 0.0  ;;  %v2109_v33 = vmul.f32 %v4133_v8, %v2042_v35  ;;  %v3152_v61 = vadd.f32 %v3151_v44, %v3150_v25  ;;  %v2034_v29 = vadd.f32 %v2033_v54, %v1873_v20 }
 0x1ef   : > { %v2143_v22 = vadd.f32 %v4150_v23, %v2104_v52  ;;  %v3153_v43 = vpop.f32.mrf.mxu0  ;;  %v3231_v39 = vpop.f32.mrf.mxu1  ;;  %v1892_v20 = vadd.f32 %v3149_v13, %v4404_v15 }
 0x1f0   : > { %v2785_v51 = vpack.c.bf16 %v2177_v40, %v2176_v42  ;;  %v2045_v26 = vadd.f32 %v3231_v39, %v1884_v59  ;;  %v2148_v1 = vadd.f32 %v4150_v23, %v2109_v33  ;;  %v2107_v28 = vmul.f32 %v4133_v8, %v2034_v29 }
 0x1f1   : > { %v2175_v58 = vmax.f32 %v2143_v22, 0.0  ;;  %v3154_v50 = vpop.f32.mrf.mxu0  ;;  %v2036_v57 = vpop.f32.mrf.mxu1  ;;  %v1897_v5 = vadd.f32 %v3152_v61, %v4401_v53  ;;  %v4405_v61 = vld [vmem:[#allocation19_spill] sm:$0xff] }
 0x1f2   : > { %2825 = vst [vmem:[%s4191_s8 + $0x48] sm:$0xff] %v2785_v51   ;;  %v2110_v60 = vmul.f32 %v4133_v8, %v2045_v26  ;;  %v3155_v10 = vadd.f32 %v3154_v50, %v3153_v43  ;;  %v2037_v47 = vadd.f32 %v2036_v57, %v1876_v45  ;;  %v2180_v18 = vmax.f32 %v2148_v1, 0.0 }
 0x1f3   : > { %v2780_v4 = vpack.c.bf16 %v2175_v58, %v2174_v9  ;;  %v3156_v6 = vpop.f32.mrf.mxu0  ;;  %v3234_v56 = vpop.f32.mrf.mxu1  ;;  %v2146_v3 = vadd.f32 %v4150_v23, %v2107_v28 }
 0x1f4   : > { %v2149_v36 = vadd.f32 %v4150_v23, %v2110_v60  ;;  %v2058_v62 = vadd.f32 %v3234_v56, %v1897_v5  ;;  %v2108_v37 = vmul.f32 %v4133_v8, %v2037_v47  ;;  %v1900_v0 = vadd.f32 %v3155_v10, %v4403_v31  ;;  %v4406_v60 = vld [vmem:[#allocation20_spill] sm:$0xff] }
 0x1f5   : > { %2824 = vst [vmem:[%s4191_s8 + $0x40] sm:$0xff] %v2780_v4   ;;  %v3157_v24 = vpop.f32.mrf.mxu0  ;;  %v2049_v30 = vpop.f32.mrf.mxu1  ;;  %v2178_v46 = vmax.f32 %v2146_v3, 0.0 }
 0x1f6   : > { %v2181_v12 = vmax.f32 %v2149_v36, 0.0  ;;  %v2113_v27 = vmul.f32 %v4133_v8, %v2058_v62  ;;  %v2050_v38 = vadd.f32 %v2049_v30, %v1889_v49  ;;  %v2147_v2 = vadd.f32 %v4150_v23, %v2108_v37 }
 0x1f7   : > { %v3159_v7 = vpop.f32.mrf.mxu0  ;;  %v3235_v41 = vpop.f32.mrf.mxu1  ;;  %v3158_v14 = vadd.f32 %v3157_v24, %v3156_v6 }
 0x1f8   : > { %v2795_v11 = vpack.c.bf16 %v2181_v12, %v2180_v18  ;;  %v2061_v25 = vadd.f32 %v3235_v41, %v1900_v0  ;;  %v2179_v21 = vmax.f32 %v2147_v2, 0.0  ;;  %v2111_v55 = vmul.f32 %v4133_v8, %v2050_v38 }
 0x1f9   : > { %v3160_v35 = vpop.f32.mrf.mxu0  ;;  %v2052_v42 = vpop.f32.mrf.mxu1  ;;  %v2152_v19 = vadd.f32 %v4150_v23, %v2113_v27  ;;  %v1905_v29 = vadd.f32 %v3158_v14, %v4405_v61 }
 0x1fa   : > { %2827 = vst [vmem:[%s4191_s8 + $0x58] sm:$0xff] %v2795_v11   ;;  %v2114_v52 = vmul.f32 %v4133_v8, %v2061_v25  ;;  %v2790_v44 = vpack.c.bf16 %v2179_v21, %v2178_v46  ;;  %v2053_v54 = vadd.f32 %v2052_v42, %v1892_v20  ;;  %v3161_v33 = vadd.f32 %v3160_v35, %v3159_v7 }
 0x1fb   : > { %v3162_v34 = vpop.f32.mrf.mxu0  ;;  %v3238_v59 = vpop.f32.mrf.mxu1  ;;  %v2150_v22 = vadd.f32 %v4150_v23, %v2111_v55  ;;  %v2184_v51 = vmax.f32 %v2152_v19, 0.0 }
 0x1fc   : > { %v2153_v40 = vadd.f32 %v4150_v23, %v2114_v52  ;;  %2826 = vst [vmem:[%s4191_s8 + $0x50] sm:$0xff] %v2790_v44   ;;  %v2112_v43 = vmul.f32 %v4133_v8, %v2053_v54  ;;  %v1908_v10 = vadd.f32 %v3161_v33, %v4406_v60 }
 0x1fd   : > { %v3163_v39 = vpop.f32.mrf.mxu0  ;;  %v2065_v32 = vpop.f32.mrf.mxu1  ;;  %v2182_v53 = vmax.f32 %v2150_v22, 0.0 }
 0x1fe   : > { %v2185_v26 = vmax.f32 %v2153_v40, 0.0  ;;  %v3164_v16 = vadd.f32 %v3163_v39, %v3162_v34  ;;  %v2066_v45 = vadd.f32 %v2065_v32, %v1905_v29  ;;  %v2151_v9 = vadd.f32 %v4150_v23, %v2112_v43 }
 0x1ff   : > { %v3165_v58 = vpop.f32.mrf.mxu0  ;;  %v3239_v1 = vpop.f32.mrf.mxu1 }
 0x200   : > { %v2805_v28 = vpack.c.bf16 %v2185_v26, %v2184_v51  ;;  %v1913_v50 = vadd.f32 %v3164_v16, %v4121_v48  ;;  %v2115_v57 = vmul.f32 %v4133_v8, %v2066_v45  ;;  %v2183_v5 = vmax.f32 %v2151_v9, 0.0 }
 0x201   : > { %v3166_v4 = vpop.f32.mrf.mxu0  ;;  %v2068_v47 = vpop.f32.mrf.mxu1 }
 0x202   : > { %2829 = vst [vmem:[%s4191_s8 + $0x68] sm:$0xff] %v2805_v28   ;;  %v2074_v6 = vadd.f32 %v3238_v59, %v1913_v50  ;;  %v3167_v56 = vadd.f32 %v3166_v4, %v3165_v58  ;;  %v2069_v36 = vadd.f32 %v2068_v47, %v1908_v10  ;;  %v2800_v62 = vpack.c.bf16 %v2183_v5, %v2182_v53 }
 0x203   : > { %v2154_v48 = vadd.f32 %v4150_v23, %v2115_v57 }
 0x204   : > { %v2117_v63 = vmul.f32 %v4133_v8, %v2074_v6  ;;  %v1916_v49 = vadd.f32 %v3167_v56, %v4136_v17  ;;  %v2116_v13 = vmul.f32 %v4133_v8, %v2069_v36  ;;  %2828 = vst [vmem:[%s4191_s8 + $0x60] sm:$0xff] %v2800_v62  }
 0x205   : > { %v2186_v24 = vmax.f32 %v2154_v48, 0.0 }
 0x206   : > { %v2077_v18 = vadd.f32 %v3239_v1, %v1916_v49  ;;  %v2155_v3 = vadd.f32 %v4150_v23, %v2116_v13  ;;  %v2156_v37 = vadd.f32 %v4150_v23, %v2117_v63 }
 0x208   : > { %v2118_v30 = vmul.f32 %v4133_v8, %v2077_v18  ;;  %v2187_v12 = vmax.f32 %v2155_v3, 0.0  ;;  %v2188_v17 = vmax.f32 %v2156_v37, 0.0 }
 0x20a   : > { %v2157_v27 = vadd.f32 %v4150_v23, %v2118_v30  ;;  %v2810_v38 = vpack.c.bf16 %v2187_v12, %v2186_v24 }
 0x20c   : > { %v2189_v31 = vmax.f32 %v2157_v27, 0.0  ;;  %2830 = vst [vmem:[%s4191_s8 + $0x70] sm:$0xff] %v2810_v38  }
 0x20e   : > { %v2815_v8 = vpack.c.bf16 %v2189_v31, %v2188_v17 }
 0x210   : > { %2831 = vst [vmem:[%s4191_s8 + $0x78] sm:$0xff] %v2815_v8  }
 0x211   : > { %3621 = shalt.err (!%p3618_p6)
}
 0x212   : > { %s3622_s23 = scalar_lea.hbm %s4321_s29, 2048  ;;  %s3626_s30 = scalar_lea.hbm %s4376_s4, 4096 }
 0x213   : > { %p3623_p4 = scmp.ne.s32.totalorder %s4321_s29, %s3622_s23  ;;  %p3627_p0 = scmp.lt.s32.totalorder %s4321_s29, %s4376_s4 }
 0x214   : > { %p3628_p3 = scmp.lt.s32.totalorder %s3626_s30, %s3622_s23 }
 0x215   : > { %p3624_p9 = pnand %p3623_p4, %p3811_p13 }
 0x216   : > { %p3629_p1 = por %p3628_p3, %p3627_p0 }
 0x217   : > { %p3625_p12 = pneg %p3624_p9 }
 0x219   : > { %p3630_p8 = pnand %p3629_p1, %p3625_p12 }
 0x21b   : > { %3633 = shalt.err (!%p3630_p8)
}
 0x21c   : > { %s3701_s9 = smov 64   ;;  %s3702_s13 = smov 4  }
 0x21d   : > { %3265 = dma.vmem_to_hbm [thread:$0]  (%p3811_p13), %s4323_s11, 2048, %s4321_s29, %s2351_s28, %s3701_s9, %s3701_s9, %s3702_s13  }
 0x21e PF: > { %s2380_s21 = sand.u32 1, %s3672_s15   ;;  %p4407_p11 = scmp.ne.s32.totalorder %s4381_s26, 0 }
 0x21f   : > { %s2381_s7 = scalar_lea.sflag [#allocation4], %s2380_s21 }
 0x220   : > { %p3276_p2 = pnand %p2490_p10, %p4407_p11 }
 0x222   : > { %p3277_p5 = pneg %p3276_p2 }
 0x224   : > { %3667 = dma.done.wait (%p3277_p5), %s2381_s7, 2048  }
 0x225   : > { %3669 = vsyncadd (%p3277_p5), %s2381_s7, 4294965248  ;;  %s21_s20 = sadd.s32 1, %s3692_s20   ;;  %s4408_s15 = smov %s3676_s16 }
 0x226   : > { %p18_p7 = scmp.ge.s32.totalorder %s21_s20, 4   ;;  %s4409_s16 = smov %s3680_s17 }
 0x227   : > { %s4410_s17 = smov %s3820_s22  ;;  %s4411_s18 = smov %s3688_s19 }
 0x228   : > { %s4412_s19 = smov %s4414_s5  ;;  %20 = sbr.rel (!%p18_p7) target bundleno = 7 (0x7), region = 92 }
 0x22d   :  { %2386 = vsyncpa [#allocation3], 1 }
 0x22e   :  { %2388 = vsyncpa [#allocation3 + $0x1], 1 }
 0x22f   :  { %2389 = vsyncpa [#allocation6], 1 }
 0x230   :  { %2390 = vsyncpa [#allocation4], 1 }
 0x231   :  { %2392 = vsyncpa [#allocation4 + $0x1], 1 }

</bundles_post_ra>
